<compile_context>
chip_gen: v5e
topology: v5e:2x2
jax: 0.10.0
libtpu: 0.0.40
codegen_flags: <defaults>
</compile_context>

<pallas_src>
import jax
import jax.numpy as jnp
import numpy as np
from jax.experimental import pallas as pl
from jax.experimental.pallas import tpu as pltpu

# ----------------------------- problem sizes -----------------------------
B = 2            # batch
S = 16           # sequence length
HB = 24          # "bert" hidden size (stand-in for pooler.dense.out_features)
E = 8            # postag embed_dim
H = HB + E       # DGCNN hidden_size (use_feature=True) = 32
NL = 5           # num_rel_labels
POS_VOCAB = 12   # len(id2pos_BIO)
BS = B * S       # batch stacked on sublanes
OUT_ROWS = 8     # sublane-padded logits rows (>= B)
OUT_LANES = 128  # lane-padded logits columns (>= NL)
MAX_K = 3

# (kernel_size, padding, dilation) for the 4 GCNN blocks -> tap shifts (k*d - p)
LAYER_SHIFTS = ((0,), (-1, 0, 1), (-2, 0, 2), (-4, 0, 4))
LAYER_K = (1, 3, 3, 3)

# act-slab channel map: 0 = pre-masked input, 1 = attention mask, 2.. = tap masks
TAP_CH = {-1: 2, 1: 3, -2: 4, 2: 5, -4: 6, 4: 7}
ACT_CH = 8

# weight-slab row layout (single (ROWS, 128) f32 buffer, static .at-style slices)
W_BASE = 0                               # conv weights: 4 layers * 3 taps * H rows
B_BASE = W_BASE + 4 * MAX_K * H          # 384: biases pre-broadcast to BS rows / layer
POOL_BASE = B_BASE + 4 * BS              # 512: pooling matrix (OUT_ROWS, BS)
WC_BASE = POOL_BASE + OUT_ROWS           # 520: classifier weight (H, 128)
BC_BASE = WC_BASE + H                    # 552: classifier bias broadcast (OUT_ROWS, 128)
WGT_ROWS = BC_BASE + OUT_ROWS            # 560 rows total (multiple of 8)


# ------------------------------- kernel ----------------------------------
def dgcnn_kernel(act_ref, wgt_ref, out_ref):
    x = act_ref[0]        # (BS, H)  input with layer-0 leading mask already folded in
    amask = act_ref[1]    # (BS, H)  attention mask, lane-broadcast host-side

    def tap_operand(xx, s):
        # Shifted (dilated) conv operand built in registers: roll + precomputed
        # validity mask (reproduces conv zero-padding AND blocks cross-batch leakage).
        if s == 0:
            return xx
        return jnp.roll(xx, -s, axis=0) * act_ref[TAP_CH[s]]

    # GCNN_block x4 : g = sigmoid(conv2(X)) ; X = X + g*(conv1(X) - X) ; X = X*mask
    for layer, shifts in enumerate(LAYER_SHIFTS):
        # accumulator seeded with pre-broadcast [b1 | b2] bias rows (no sublane bcast)
        y = wgt_ref[B_BASE + layer * BS: B_BASE + (layer + 1) * BS, :][:, :2 * H]
        for k, s in enumerate(shifts):
            r0 = W_BASE + (layer * MAX_K + k) * H
            wk = wgt_ref[r0:r0 + H, :][:, :2 * H]          # (H, 2H) [conv1 | conv2]
            y = y + jnp.dot(tap_operand(x, s), wk,
                            preferred_element_type=jnp.float32)
        val = y[:, :H]                    # conv1 output
        gate = jax.nn.sigmoid(y[:, H:])   # sigmoid(conv2 output)
        x = (x + gate * (val - x)) * amask

    # adaptive_avg_pool1d(., 1).squeeze(-1) == mean over the full sequence per batch
    # element, expressed with a host-precomputed segment-mean matrix (rows >= B zero).
    pool_mat = wgt_ref[POOL_BASE:POOL_BASE + OUT_ROWS, :][:, :BS]        # (8, BS)
    pooled = jnp.dot(pool_mat, x, preferred_element_type=jnp.float32)    # (8, H)

    # dropout is identity at inference; classifier bias is pre-broadcast to (8, 128)
    # so the final store is one dense full-tile write.
    wc = wgt_ref[WC_BASE:WC_BASE + H, :]                                 # (H, 128)
    bc = wgt_ref[BC_BASE:BC_BASE + OUT_ROWS, :]                          # (8, 128)
    out_ref[...] = jnp.dot(pooled, wc, preferred_element_type=jnp.float32) + bc


# ------------------------------ wrapper -----------------------------------
def bert_multiclass_dgcnn_forward(sequence_output, attention_mask, postag, params):
    """sequence_output: (B,S,HB) f32, attention_mask: (B,S) int, postag: (B,S) int."""
    # glue: postag embedding lookup + use_feature concat; stack batch on sublanes
    postag_emb = jnp.take(params["embed"], postag, axis=0)               # (B,S,E)
    x = jnp.concatenate([sequence_output, postag_emb], axis=-1)          # (B,S,H)
    x = x.astype(jnp.float32).reshape(BS, H)                             # (B*S, H)
    amask_b = jnp.broadcast_to(
        attention_mask.astype(jnp.float32).reshape(BS, 1), (BS, H))      # (B*S, H)

    # --- activation slab: 8 channels of (BS, H) -> ONE DMA -------------------------
    t_local = np.arange(BS, dtype=np.int64) % S
    chans = [x * amask_b, amask_b]                       # layer-0 leading mask folded in
    tap_np = {}
    for s in TAP_CH:
        m = ((t_local + s >= 0) & (t_local + s < S)).astype(np.float32)  # (BS,)
        tap_np[s] = np.broadcast_to(m[:, None], (BS, H))
    for s, _ch in sorted(TAP_CH.items(), key=lambda kv: kv[1]):
        chans.append(jnp.asarray(tap_np[s]))
    act_slab = jnp.stack(chans, axis=0)                                  # (8, BS, H)

    # --- weight slab: conv weights + biases + pool + classifier -> ONE DMA ---------
    # PyTorch Conv1d weight is (out,in,K); per tap k the channels-last matmul operand
    # is W[:,:,k].T -> (H,H).  conv1/conv2 fused along the output dim -> (H, 2H).
    wgt = np.zeros((WGT_ROWS, OUT_LANES), np.float32)
    for l in range(4):
        w1 = np.asarray(params[f"w1_{l}"])                               # (H,H,K)
        w2 = np.asarray(params[f"w2_{l}"])                               # (H,H,K)
        for k in range(LAYER_K[l]):
            r0 = W_BASE + (l * MAX_K + k) * H
            wgt[r0:r0 + H, :H] = w1[:, :, k].T
            wgt[r0:r0 + H, H:2 * H] = w2[:, :, k].T
        b_row = np.concatenate([np.asarray(params[f"b1_{l}"]),
                                np.asarray(params[f"b2_{l}"])])          # (2H,)
        wgt[B_BASE + l * BS: B_BASE + (l + 1) * BS, :2 * H] = b_row[None, :]
    for b in range(B):
        wgt[POOL_BASE + b, b * S:(b + 1) * S] = 1.0 / S                  # segment mean
    wgt[WC_BASE:WC_BASE + H, :NL] = np.asarray(params["wc"]).T           # (H, NL)
    wgt[BC_BASE:BC_BASE + OUT_ROWS, :NL] = np.asarray(params["bc"])[None, :]

    vmem_spec = pl.BlockSpec(memory_space=pltpu.MemorySpace.VMEM)
    out = pl.pallas_call(
        dgcnn_kernel,
        out_shape=jax.ShapeDtypeStruct((OUT_ROWS, OUT_LANES), jnp.float32),
        in_specs=[vmem_spec, vmem_spec],
        out_specs=vmem_spec,
    )(act_slab, jnp.asarray(wgt))
    return out[:B, :NL]                                                  # (B, NL)


# --------------------------- pure-JAX reference ----------------------------
def _conv1d_ref(x_ncl, w, b, p, d):
    y = jax.lax.conv_general_dilated(
        x_ncl, w, window_strides=(1,), padding=[(p, p)], rhs_dilation=(d,),
        dimension_numbers=("NCH", "OIH", "NCH"))
    return y + b[None, :, None]


def forward_ref(sequence_output, attention_mask, postag, params):
    postag_emb = jnp.take(params["embed"], postag, axis=0)
    x = jnp.concatenate([sequence_output, postag_emb], axis=-1)
    X = jnp.transpose(x, (0, 2, 1))                                      # (B,H,S) NCL
    m = attention_mask.astype(jnp.float32)[:, None, :]
    cfgs = [(0, 1), (1, 1), (2, 2), (4, 4)]                              # (padding, dilation)
    for l, (p, d) in enumerate(cfgs):
        X = X * m
        gate = jax.nn.sigmoid(_conv1d_ref(X, params[f"w2_{l}"], params[f"b2_{l}"], p, d))
        X = X * (1.0 - gate) + _conv1d_ref(X, params[f"w1_{l}"], params[f"b1_{l}"], p, d) * gate
        X = X * m
    pooled = jnp.mean(X, axis=-1)                                        # (B,H)
    return pooled @ params["wc"].T + params["bc"]


# --------------------------------- main ------------------------------------
if __name__ == "__main__":
    key = jax.random.PRNGKey(0)
    ks = jax.random.split(key, 24)

    params = {"embed": 0.1 * jax.random.normal(ks[0], (POS_VOCAB, E), jnp.float32)}
    ki = 1
    for l in range(4):
        K = LAYER_K[l]
        params[f"w1_{l}"] = 0.1 * jax.random.normal(ks[ki], (H, H, K), jnp.float32); ki += 1
        params[f"b1_{l}"] = 0.05 * jax.random.normal(ks[ki], (H,), jnp.float32); ki += 1
        params[f"w2_{l}"] = 0.1 * jax.random.normal(ks[ki], (H, H, K), jnp.float32); ki += 1
        params[f"b2_{l}"] = 0.05 * jax.random.normal(ks[ki], (H,), jnp.float32); ki += 1
    params["wc"] = 0.1 * jax.random.normal(ks[ki], (NL, H), jnp.float32); ki += 1
    params["bc"] = 0.05 * jax.random.normal(ks[ki], (NL,), jnp.float32); ki += 1

    # synthetic "BERT" sequence output + inputs
    sequence_output = jax.random.normal(ks[ki], (B, S, HB), jnp.float32); ki += 1
    postag = jax.random.randint(ks[ki], (B, S), 0, POS_VOCAB); ki += 1
    attention_mask = jnp.concatenate(
        [jnp.ones((B, S - 4), jnp.int32),
         jnp.array([[1, 1, 1, 1], [0, 0, 0, 0]], jnp.int32)], axis=1)    # ragged masking

    logits = bert_multiclass_dgcnn_forward(sequence_output, attention_mask, postag, params)
    logits = jax.block_until_ready(logits)

    ref = forward_ref(sequence_output, attention_mask, postag, params)
    np.testing.assert_allclose(np.asarray(logits), np.asarray(ref), rtol=1e-4, atol=1e-4)

    print("KERNEL_OK")
</pallas_src>

<mosaic_0001>
module attributes {stable_mosaic.version = 11 : i64} {
  func.func @dgcnn_kernel(%arg0: memref<8x32x32xf32, #tpu.memory_space<vmem>>, %arg1: memref<560x128xf32, #tpu.memory_space<vmem>>, %arg2: memref<8x128xf32, #tpu.memory_space<vmem>>) attributes {dimension_semantics = [], scalar_prefetch = 0 : i64, scratch_operands = 0 : i64, tpu.core_type = #tpu.core_type<tc>} {
    %c0 = arith.constant 0 : index
    %c0_0 = arith.constant 0 : index
    %c0_1 = arith.constant 0 : index
    %0 = vector.load %arg0[%c0, %c0_0, %c0_1] : memref<8x32x32xf32, #tpu.memory_space<vmem>>, vector<1x32x32xf32>
    %1 = vector.shape_cast %0 : vector<1x32x32xf32> to vector<32x32xf32>
    %c1 = arith.constant 1 : index
    %c0_2 = arith.constant 0 : index
    %c0_3 = arith.constant 0 : index
    %2 = vector.load %arg0[%c1, %c0_2, %c0_3] : memref<8x32x32xf32, #tpu.memory_space<vmem>>, vector<1x32x32xf32>
    %3 = vector.shape_cast %2 : vector<1x32x32xf32> to vector<32x32xf32>
    %c384 = arith.constant 384 : index
    %c0_4 = arith.constant 0 : index
    %4 = vector.load %arg1[%c384, %c0_4] : memref<560x128xf32, #tpu.memory_space<vmem>>, vector<32x128xf32>
    %5 = vector.extract_strided_slice %4 {offsets = [0, 0], sizes = [32, 64], strides = [1, 1]} : vector<32x128xf32> to vector<32x64xf32>
    %c0_5 = arith.constant 0 : index
    %c0_6 = arith.constant 0 : index
    %6 = vector.load %arg1[%c0_5, %c0_6] : memref<560x128xf32, #tpu.memory_space<vmem>>, vector<32x128xf32>
    %7 = vector.extract_strided_slice %6 {offsets = [0, 0], sizes = [32, 64], strides = [1, 1]} : vector<32x128xf32> to vector<32x64xf32>
    %cst = arith.constant dense<0.000000e+00> : vector<32x64xf32>
    %8 = tpu.matmul %1, %7, %cst {dimension_numbers = #tpu.dot_dimension_numbers<[1], [0], [0], [1], [0, 0, 1, 1], [], []>} : vector<32x32xf32>, vector<32x64xf32>, vector<32x64xf32> -> vector<32x64xf32>
    %9 = arith.addf %5, %8 : vector<32x64xf32>
    %10 = vector.extract_strided_slice %9 {offsets = [0, 0], sizes = [32, 32], strides = [1, 1]} : vector<32x64xf32> to vector<32x32xf32>
    %11 = vector.extract_strided_slice %9 {offsets = [0, 32], sizes = [32, 32], strides = [1, 1]} : vector<32x64xf32> to vector<32x32xf32>
    %12 = arith.negf %11 : vector<32x32xf32>
    %13 = math.exp %12 : vector<32x32xf32>
    %cst_7 = arith.constant 1.000000e+00 : f32
    %14 = vector.broadcast %cst_7 : f32 to vector<32x32xf32>
    %15 = arith.addf %14, %13 : vector<32x32xf32>
    %16 = arith.divf %14, %15 : vector<32x32xf32>
    %17 = arith.subf %10, %1 : vector<32x32xf32>
    %18 = arith.mulf %16, %17 : vector<32x32xf32>
    %19 = arith.addf %1, %18 : vector<32x32xf32>
    %20 = arith.mulf %19, %3 : vector<32x32xf32>
    %c416 = arith.constant 416 : index
    %c0_8 = arith.constant 0 : index
    %21 = vector.load %arg1[%c416, %c0_8] : memref<560x128xf32, #tpu.memory_space<vmem>>, vector<32x128xf32>
    %22 = vector.extract_strided_slice %21 {offsets = [0, 0], sizes = [32, 64], strides = [1, 1]} : vector<32x128xf32> to vector<32x64xf32>
    %c96 = arith.constant 96 : index
    %c0_9 = arith.constant 0 : index
    %23 = vector.load %arg1[%c96, %c0_9] : memref<560x128xf32, #tpu.memory_space<vmem>>, vector<32x128xf32>
    %24 = vector.extract_strided_slice %23 {offsets = [0, 0], sizes = [32, 64], strides = [1, 1]} : vector<32x128xf32> to vector<32x64xf32>
    %25 = vector.extract_strided_slice %20 {offsets = [31, 0], sizes = [1, 32], strides = [1, 1]} : vector<32x32xf32> to vector<1x32xf32>
    %26 = vector.extract_strided_slice %20 {offsets = [0, 0], sizes = [31, 32], strides = [1, 1]} : vector<32x32xf32> to vector<31x32xf32>
    %27 = tpu.concatenate %25, %26 in 0 : vector<1x32xf32>, vector<31x32xf32> -> vector<32x32xf32>
    %c2 = arith.constant 2 : index
    %c0_10 = arith.constant 0 : index
    %c0_11 = arith.constant 0 : index
    %28 = vector.load %arg0[%c2, %c0_10, %c0_11] : memref<8x32x32xf32, #tpu.memory_space<vmem>>, vector<1x32x32xf32>
    %29 = vector.shape_cast %28 : vector<1x32x32xf32> to vector<32x32xf32>
    %30 = arith.mulf %27, %29 : vector<32x32xf32>
    %cst_12 = arith.constant dense<0.000000e+00> : vector<32x64xf32>
    %31 = tpu.matmul %30, %24, %cst_12 {dimension_numbers = #tpu.dot_dimension_numbers<[1], [0], [0], [1], [0, 0, 1, 1], [], []>} : vector<32x32xf32>, vector<32x64xf32>, vector<32x64xf32> -> vector<32x64xf32>
    %32 = arith.addf %22, %31 : vector<32x64xf32>
    %c128 = arith.constant 128 : index
    %c0_13 = arith.constant 0 : index
    %33 = vector.load %arg1[%c128, %c0_13] : memref<560x128xf32, #tpu.memory_space<vmem>>, vector<32x128xf32>
    %34 = vector.extract_strided_slice %33 {offsets = [0, 0], sizes = [32, 64], strides = [1, 1]} : vector<32x128xf32> to vector<32x64xf32>
    %cst_14 = arith.constant dense<0.000000e+00> : vector<32x64xf32>
    %35 = tpu.matmul %20, %34, %cst_14 {dimension_numbers = #tpu.dot_dimension_numbers<[1], [0], [0], [1], [0, 0, 1, 1], [], []>} : vector<32x32xf32>, vector<32x64xf32>, vector<32x64xf32> -> vector<32x64xf32>
    %36 = arith.addf %32, %35 : vector<32x64xf32>
    %c160 = arith.constant 160 : index
    %c0_15 = arith.constant 0 : index
    %37 = vector.load %arg1[%c160, %c0_15] : memref<560x128xf32, #tpu.memory_space<vmem>>, vector<32x128xf32>
    %38 = vector.extract_strided_slice %37 {offsets = [0, 0], sizes = [32, 64], strides = [1, 1]} : vector<32x128xf32> to vector<32x64xf32>
    %39 = vector.extract_strided_slice %20 {offsets = [1, 0], sizes = [31, 32], strides = [1, 1]} : vector<32x32xf32> to vector<31x32xf32>
    %40 = vector.extract_strided_slice %20 {offsets = [0, 0], sizes = [1, 32], strides = [1, 1]} : vector<32x32xf32> to vector<1x32xf32>
    %41 = tpu.concatenate %39, %40 in 0 : vector<31x32xf32>, vector<1x32xf32> -> vector<32x32xf32>
    %c3 = arith.constant 3 : index
    %c0_16 = arith.constant 0 : index
    %c0_17 = arith.constant 0 : index
    %42 = vector.load %arg0[%c3, %c0_16, %c0_17] : memref<8x32x32xf32, #tpu.memory_space<vmem>>, vector<1x32x32xf32>
    %43 = vector.shape_cast %42 : vector<1x32x32xf32> to vector<32x32xf32>
    %44 = arith.mulf %41, %43 : vector<32x32xf32>
    %cst_18 = arith.constant dense<0.000000e+00> : vector<32x64xf32>
    %45 = tpu.matmul %44, %38, %cst_18 {dimension_numbers = #tpu.dot_dimension_numbers<[1], [0], [0], [1], [0, 0, 1, 1], [], []>} : vector<32x32xf32>, vector<32x64xf32>, vector<32x64xf32> -> vector<32x64xf32>
    %46 = arith.addf %36, %45 : vector<32x64xf32>
    %47 = vector.extract_strided_slice %46 {offsets = [0, 0], sizes = [32, 32], strides = [1, 1]} : vector<32x64xf32> to vector<32x32xf32>
    %48 = vector.extract_strided_slice %46 {offsets = [0, 32], sizes = [32, 32], strides = [1, 1]} : vector<32x64xf32> to vector<32x32xf32>
    %49 = arith.negf %48 : vector<32x32xf32>
    %50 = math.exp %49 : vector<32x32xf32>
    %cst_19 = arith.constant 1.000000e+00 : f32
    %51 = vector.broadcast %cst_19 : f32 to vector<32x32xf32>
    %52 = arith.addf %51, %50 : vector<32x32xf32>
    %53 = arith.divf %51, %52 : vector<32x32xf32>
    %54 = arith.subf %47, %20 : vector<32x32xf32>
    %55 = arith.mulf %53, %54 : vector<32x32xf32>
    %56 = arith.addf %20, %55 : vector<32x32xf32>
    %57 = arith.mulf %56, %3 : vector<32x32xf32>
    %c448 = arith.constant 448 : index
    %c0_20 = arith.constant 0 : index
    %58 = vector.load %arg1[%c448, %c0_20] : memref<560x128xf32, #tpu.memory_space<vmem>>, vector<32x128xf32>
    %59 = vector.extract_strided_slice %58 {offsets = [0, 0], sizes = [32, 64], strides = [1, 1]} : vector<32x128xf32> to vector<32x64xf32>
    %c192 = arith.constant 192 : index
    %c0_21 = arith.constant 0 : index
    %60 = vector.load %arg1[%c192, %c0_21] : memref<560x128xf32, #tpu.memory_space<vmem>>, vector<32x128xf32>
    %61 = vector.extract_strided_slice %60 {offsets = [0, 0], sizes = [32, 64], strides = [1, 1]} : vector<32x128xf32> to vector<32x64xf32>
    %62 = vector.extract_strided_slice %57 {offsets = [30, 0], sizes = [2, 32], strides = [1, 1]} : vector<32x32xf32> to vector<2x32xf32>
    %63 = vector.extract_strided_slice %57 {offsets = [0, 0], sizes = [30, 32], strides = [1, 1]} : vector<32x32xf32> to vector<30x32xf32>
    %64 = tpu.concatenate %62, %63 in 0 : vector<2x32xf32>, vector<30x32xf32> -> vector<32x32xf32>
    %c4 = arith.constant 4 : index
    %c0_22 = arith.constant 0 : index
    %c0_23 = arith.constant 0 : index
    %65 = vector.load %arg0[%c4, %c0_22, %c0_23] : memref<8x32x32xf32, #tpu.memory_space<vmem>>, vector<1x32x32xf32>
    %66 = vector.shape_cast %65 : vector<1x32x32xf32> to vector<32x32xf32>
    %67 = arith.mulf %64, %66 : vector<32x32xf32>
    %cst_24 = arith.constant dense<0.000000e+00> : vector<32x64xf32>
    %68 = tpu.matmul %67, %61, %cst_24 {dimension_numbers = #tpu.dot_dimension_numbers<[1], [0], [0], [1], [0, 0, 1, 1], [], []>} : vector<32x32xf32>, vector<32x64xf32>, vector<32x64xf32> -> vector<32x64xf32>
    %69 = arith.addf %59, %68 : vector<32x64xf32>
    %c224 = arith.constant 224 : index
    %c0_25 = arith.constant 0 : index
    %70 = vector.load %arg1[%c224, %c0_25] : memref<560x128xf32, #tpu.memory_space<vmem>>, vector<32x128xf32>
    %71 = vector.extract_strided_slice %70 {offsets = [0, 0], sizes = [32, 64], strides = [1, 1]} : vector<32x128xf32> to vector<32x64xf32>
    %cst_26 = arith.constant dense<0.000000e+00> : vector<32x64xf32>
    %72 = tpu.matmul %57, %71, %cst_26 {dimension_numbers = #tpu.dot_dimension_numbers<[1], [0], [0], [1], [0, 0, 1, 1], [], []>} : vector<32x32xf32>, vector<32x64xf32>, vector<32x64xf32> -> vector<32x64xf32>
    %73 = arith.addf %69, %72 : vector<32x64xf32>
    %c256 = arith.constant 256 : index
    %c0_27 = arith.constant 0 : index
    %74 = vector.load %arg1[%c256, %c0_27] : memref<560x128xf32, #tpu.memory_space<vmem>>, vector<32x128xf32>
    %75 = vector.extract_strided_slice %74 {offsets = [0, 0], sizes = [32, 64], strides = [1, 1]} : vector<32x128xf32> to vector<32x64xf32>
    %76 = vector.extract_strided_slice %57 {offsets = [2, 0], sizes = [30, 32], strides = [1, 1]} : vector<32x32xf32> to vector<30x32xf32>
    %77 = vector.extract_strided_slice %57 {offsets = [0, 0], sizes = [2, 32], strides = [1, 1]} : vector<32x32xf32> to vector<2x32xf32>
    %78 = tpu.concatenate %76, %77 in 0 : vector<30x32xf32>, vector<2x32xf32> -> vector<32x32xf32>
    %c5 = arith.constant 5 : index
    %c0_28 = arith.constant 0 : index
    %c0_29 = arith.constant 0 : index
    %79 = vector.load %arg0[%c5, %c0_28, %c0_29] : memref<8x32x32xf32, #tpu.memory_space<vmem>>, vector<1x32x32xf32>
    %80 = vector.shape_cast %79 : vector<1x32x32xf32> to vector<32x32xf32>
    %81 = arith.mulf %78, %80 : vector<32x32xf32>
    %cst_30 = arith.constant dense<0.000000e+00> : vector<32x64xf32>
    %82 = tpu.matmul %81, %75, %cst_30 {dimension_numbers = #tpu.dot_dimension_numbers<[1], [0], [0], [1], [0, 0, 1, 1], [], []>} : vector<32x32xf32>, vector<32x64xf32>, vector<32x64xf32> -> vector<32x64xf32>
    %83 = arith.addf %73, %82 : vector<32x64xf32>
    %84 = vector.extract_strided_slice %83 {offsets = [0, 0], sizes = [32, 32], strides = [1, 1]} : vector<32x64xf32> to vector<32x32xf32>
    %85 = vector.extract_strided_slice %83 {offsets = [0, 32], sizes = [32, 32], strides = [1, 1]} : vector<32x64xf32> to vector<32x32xf32>
    %86 = arith.negf %85 : vector<32x32xf32>
    %87 = math.exp %86 : vector<32x32xf32>
    %cst_31 = arith.constant 1.000000e+00 : f32
    %88 = vector.broadcast %cst_31 : f32 to vector<32x32xf32>
    %89 = arith.addf %88, %87 : vector<32x32xf32>
    %90 = arith.divf %88, %89 : vector<32x32xf32>
    %91 = arith.subf %84, %57 : vector<32x32xf32>
    %92 = arith.mulf %90, %91 : vector<32x32xf32>
    %93 = arith.addf %57, %92 : vector<32x32xf32>
    %94 = arith.mulf %93, %3 : vector<32x32xf32>
    %c480 = arith.constant 480 : index
    %c0_32 = arith.constant 0 : index
    %95 = vector.load %arg1[%c480, %c0_32] : memref<560x128xf32, #tpu.memory_space<vmem>>, vector<32x128xf32>
    %96 = vector.extract_strided_slice %95 {offsets = [0, 0], sizes = [32, 64], strides = [1, 1]} : vector<32x128xf32> to vector<32x64xf32>
    %c288 = arith.constant 288 : index
    %c0_33 = arith.constant 0 : index
    %97 = vector.load %arg1[%c288, %c0_33] : memref<560x128xf32, #tpu.memory_space<vmem>>, vector<32x128xf32>
    %98 = vector.extract_strided_slice %97 {offsets = [0, 0], sizes = [32, 64], strides = [1, 1]} : vector<32x128xf32> to vector<32x64xf32>
    %99 = vector.extract_strided_slice %94 {offsets = [28, 0], sizes = [4, 32], strides = [1, 1]} : vector<32x32xf32> to vector<4x32xf32>
    %100 = vector.extract_strided_slice %94 {offsets = [0, 0], sizes = [28, 32], strides = [1, 1]} : vector<32x32xf32> to vector<28x32xf32>
    %101 = tpu.concatenate %99, %100 in 0 : vector<4x32xf32>, vector<28x32xf32> -> vector<32x32xf32>
    %c6 = arith.constant 6 : index
    %c0_34 = arith.constant 0 : index
    %c0_35 = arith.constant 0 : index
    %102 = vector.load %arg0[%c6, %c0_34, %c0_35] : memref<8x32x32xf32, #tpu.memory_space<vmem>>, vector<1x32x32xf32>
    %103 = vector.shape_cast %102 : vector<1x32x32xf32> to vector<32x32xf32>
    %104 = arith.mulf %101, %103 : vector<32x32xf32>
    %cst_36 = arith.constant dense<0.000000e+00> : vector<32x64xf32>
    %105 = tpu.matmul %104, %98, %cst_36 {dimension_numbers = #tpu.dot_dimension_numbers<[1], [0], [0], [1], [0, 0, 1, 1], [], []>} : vector<32x32xf32>, vector<32x64xf32>, vector<32x64xf32> -> vector<32x64xf32>
    %106 = arith.addf %96, %105 : vector<32x64xf32>
    %c320 = arith.constant 320 : index
    %c0_37 = arith.constant 0 : index
    %107 = vector.load %arg1[%c320, %c0_37] : memref<560x128xf32, #tpu.memory_space<vmem>>, vector<32x128xf32>
    %108 = vector.extract_strided_slice %107 {offsets = [0, 0], sizes = [32, 64], strides = [1, 1]} : vector<32x128xf32> to vector<32x64xf32>
    %cst_38 = arith.constant dense<0.000000e+00> : vector<32x64xf32>
    %109 = tpu.matmul %94, %108, %cst_38 {dimension_numbers = #tpu.dot_dimension_numbers<[1], [0], [0], [1], [0, 0, 1, 1], [], []>} : vector<32x32xf32>, vector<32x64xf32>, vector<32x64xf32> -> vector<32x64xf32>
    %110 = arith.addf %106, %109 : vector<32x64xf32>
    %c352 = arith.constant 352 : index
    %c0_39 = arith.constant 0 : index
    %111 = vector.load %arg1[%c352, %c0_39] : memref<560x128xf32, #tpu.memory_space<vmem>>, vector<32x128xf32>
    %112 = vector.extract_strided_slice %111 {offsets = [0, 0], sizes = [32, 64], strides = [1, 1]} : vector<32x128xf32> to vector<32x64xf32>
    %113 = vector.extract_strided_slice %94 {offsets = [4, 0], sizes = [28, 32], strides = [1, 1]} : vector<32x32xf32> to vector<28x32xf32>
    %114 = vector.extract_strided_slice %94 {offsets = [0, 0], sizes = [4, 32], strides = [1, 1]} : vector<32x32xf32> to vector<4x32xf32>
    %115 = tpu.concatenate %113, %114 in 0 : vector<28x32xf32>, vector<4x32xf32> -> vector<32x32xf32>
    %c7 = arith.constant 7 : index
    %c0_40 = arith.constant 0 : index
    %c0_41 = arith.constant 0 : index
    %116 = vector.load %arg0[%c7, %c0_40, %c0_41] : memref<8x32x32xf32, #tpu.memory_space<vmem>>, vector<1x32x32xf32>
    %117 = vector.shape_cast %116 : vector<1x32x32xf32> to vector<32x32xf32>
    %118 = arith.mulf %115, %117 : vector<32x32xf32>
    %cst_42 = arith.constant dense<0.000000e+00> : vector<32x64xf32>
    %119 = tpu.matmul %118, %112, %cst_42 {dimension_numbers = #tpu.dot_dimension_numbers<[1], [0], [0], [1], [0, 0, 1, 1], [], []>} : vector<32x32xf32>, vector<32x64xf32>, vector<32x64xf32> -> vector<32x64xf32>
    %120 = arith.addf %110, %119 : vector<32x64xf32>
    %121 = vector.extract_strided_slice %120 {offsets = [0, 0], sizes = [32, 32], strides = [1, 1]} : vector<32x64xf32> to vector<32x32xf32>
    %122 = vector.extract_strided_slice %120 {offsets = [0, 32], sizes = [32, 32], strides = [1, 1]} : vector<32x64xf32> to vector<32x32xf32>
    %123 = arith.negf %122 : vector<32x32xf32>
    %124 = math.exp %123 : vector<32x32xf32>
    %cst_43 = arith.constant 1.000000e+00 : f32
    %125 = vector.broadcast %cst_43 : f32 to vector<32x32xf32>
    %126 = arith.addf %125, %124 : vector<32x32xf32>
    %127 = arith.divf %125, %126 : vector<32x32xf32>
    %128 = arith.subf %121, %94 : vector<32x32xf32>
    %129 = arith.mulf %127, %128 : vector<32x32xf32>
    %130 = arith.addf %94, %129 : vector<32x32xf32>
    %131 = arith.mulf %130, %3 : vector<32x32xf32>
    %c512 = arith.constant 512 : index
    %c0_44 = arith.constant 0 : index
    %132 = vector.load %arg1[%c512, %c0_44] : memref<560x128xf32, #tpu.memory_space<vmem>>, vector<8x128xf32>
    %133 = vector.extract_strided_slice %132 {offsets = [0, 0], sizes = [8, 32], strides = [1, 1]} : vector<8x128xf32> to vector<8x32xf32>
    %cst_45 = arith.constant dense<0.000000e+00> : vector<8x32xf32>
    %134 = tpu.matmul %133, %131, %cst_45 {dimension_numbers = #tpu.dot_dimension_numbers<[1], [0], [0], [1], [0, 0, 1, 1], [], []>} : vector<8x32xf32>, vector<32x32xf32>, vector<8x32xf32> -> vector<8x32xf32>
    %c520 = arith.constant 520 : index
    %c0_46 = arith.constant 0 : index
    %135 = vector.load %arg1[%c520, %c0_46] : memref<560x128xf32, #tpu.memory_space<vmem>>, vector<32x128xf32>
    %c552 = arith.constant 552 : index
    %c0_47 = arith.constant 0 : index
    %136 = vector.load %arg1[%c552, %c0_47] : memref<560x128xf32, #tpu.memory_space<vmem>>, vector<8x128xf32>
    %cst_48 = arith.constant dense<0.000000e+00> : vector<8x128xf32>
    %137 = tpu.matmul %134, %135, %cst_48 {dimension_numbers = #tpu.dot_dimension_numbers<[1], [0], [0], [1], [0, 0, 1, 1], [], []>} : vector<8x32xf32>, vector<32x128xf32>, vector<8x128xf32> -> vector<8x128xf32>
    %138 = arith.addf %137, %136 : vector<8x128xf32>
    %c0_49 = arith.constant 0 : index
    %c0_50 = arith.constant 0 : index
    %139 = vector.load %arg2[%c0_49, %c0_50] : memref<8x128xf32, #tpu.memory_space<vmem>>, vector<8x128xf32>
    tpu.vector_store %arg2[%c0_49, %c0_50], %138 {strides = array<i32>} : memref<8x128xf32, #tpu.memory_space<vmem>>, vector<8x128xf32>,
    return
  }
}

</mosaic_0001>

<bundles_post_ra>
// kernel: tpu_custom_call.1
= control target key start
LH: loop header
LB: loop body
LE: loop exit
PB: predicated region body
PF: predicated region fallthrough
CT: control target
= control target key end

     0   :  { %7 = vsyncpa [#allocation3], 0  ;;  %s1722_s0 = inlined_call_operand.hbm [shape: f32[8,32,32], index: 0, kind: input, shape index: {}]   ;;  %s1723_s1 = inlined_call_operand.hbm [shape: f32[560,128], index: 1, kind: input, shape index: {}]   ;;  %s1724_s2 = inlined_call_operand.hbm [shape: f32[8,128], index: 2, kind: output, shape index: {}]  }
   0x1   :  { %8 = vsyncpa [#allocation6], 0 }
   0x2   :  { %9 = vsyncpa [#allocation4], 0  ;;  %s14_s11 = sshll.u32 %s1722_s0, 4  ;;  %s1470_s12 = smov [#allocation2]   ;;  %s15_s11 = int_to_ptr.hbm [resolvable:$true] %s14_s11 }
   0x3   :  { %s16_s13 = sshll.u32 %s1470_s12, 4  ;;  %s27_s16 = sshll.u32 %s1723_s1, 4  ;;  %s17_s13 = int_to_ptr.vmem [resolvable:$true] %s16_s13  ;;  %s28_s16 = int_to_ptr.hbm [resolvable:$true] %s27_s16 }
   0x4   :  { %s1471_s17 = smov 128   ;;  %s1472_s18 = smov 8  }
   0x5   :  { %22 = dma.hbm_to_vmem [thread:$0]  %s15_s11, 4096, %s17_s13, [#allocation3], %s1471_s17, %s1471_s17, %s1472_s18  }
   0x6   :  { %s1473_s19 = smov [#allocation5]  }
   0x7   :  { %s29_s20 = sshll.u32 %s1473_s19, 4  ;;  %s30_s20 = int_to_ptr.vmem [resolvable:$true] %s29_s20 }
   0x8   :  { %35 = dma.hbm_to_vmem [thread:$0]  %s28_s16, 8960, %s30_s20, [#allocation6], %s1471_s17, %s1471_s17, %s1472_s18  }
   0x9   :  { %1464 = dma.done.wait [#allocation3], 4096  }
   0xa   :  { %1465 = vsyncadd [#allocation3], 4294963200 }
   0xb   :  { %1466 = dma.done.wait [#allocation6], 8960  }
   0xc   :  { %1467 = vsyncadd [#allocation6], 4294958336  ;;  %v60_v0 = vld [vmem:[#allocation5 + $0x18] sm:$0xff]  ;;  %v59_v1 = vld [vmem:[#allocation5 + $0x10] sm:$0xff]  ;;  %vm61_vm0 = vcmask 261120   ;;  %s1474_s0 = smov 32  }
   0xd   :  { %86 = vmatpush.msra.mxu0 %v60_v0  ;;  %1309 = vmatpush.msra.mxu2 %v60_v0  ;;  %v58_v2 = vld [vmem:[#allocation5 + $0x8] sm:$0xff]  ;;  %v57_v3 = vld [vmem:[#allocation5] sm:$0xff]  ;;  %v1500_v5 = vld [vmem:[#allocation2 + $0x18] sm:$0xff]  ;;  %s1475_s1 = smov 96   ;;  %s1476_s21 = smov [#allocation7]  }
   0xe   :  { %v1498_v4 = vld [vmem:[#allocation2] sm:$0xff]  ;;  %v1506_v6 = vld [vmem:[#allocation2 + $0x8] sm:$0xff]  ;;  %v1510_v7 = vld [vmem:[#allocation2 + $0x10] sm:$0xff]  ;;  %s1238_s22 = sshll.u32 %s1476_s21, 4  ;;  %s1240_s25 = sshll.u32 %s1724_s2, 4  ;;  %s1239_s22 = int_to_ptr.vmem [resolvable:$true] %s1238_s22  ;;  %s1241_s25 = int_to_ptr.hbm [resolvable:$true] %s1240_s25 }
   0xf   :  { %87 = vmatpush.msra.mxu0 %v59_v1  ;;  %1310 = vmatpush.msra.mxu2 %v59_v1  ;;  %v53_v8 = vld [vmem:[#allocation5 + $0x180] sm:$0xff]  ;;  %v54_v12 = vld [vmem:[#allocation5 + $0x188] sm:$0xff]  ;;  %v55_v16 = vld [vmem:[#allocation5 + $0x190] sm:$0xff] }
  0x10   :  { %v56_v20 = vld [vmem:[#allocation5 + $0x198] sm:$0xff] }
  0x11   :  { %88 = vmatpush.msra.mxu0 %v58_v2  ;;  %1311 = vmatpush.msra.mxu2 %v58_v2 }
  0x13   :  { %89 = vmatpush.msra.mxu0 %v57_v3  ;;  %1312 = vmatpush.msra.mxu2 %v57_v3 }
  0x14   :  { %1251 = vmatmul.msk.f32.vlgmr.msra.gmra.mxu0 %vm61_vm0, %v1498_v4  ;;  %1254 = vmatmul.msk.f32.vlgmr.msra.gmra.mxu2 %vm61_vm0, %v1500_v5 }
  0x1c   :  { %1252 = vmatmul.msk.f32.gmra.mxu0 %vm61_vm0, %v1506_v6 }
  0x24   :  { %1253 = vmatmul.msk.f32.gmra.mxu0 %vm61_vm0, %v1510_v7 }
  0x91   :  { %v91_v9 = vpop.f32.mrf.mxu0 }
  0x92   :  { %v103_v10 = vadd.f32 %v91_v9, %v53_v8 }
  0x94   :  { %v183_v11 = vsub.f32 %v103_v10, %v1498_v4  ;;  %v1255_v24 = vmul.f32 -1.442695, %v103_v10 }
  0x96   :  { %191 = vrot.lane.b32.xlu1 %v183_v11, %s1474_s0  ;;  %1324 = vpow2.f32 %v1255_v24  ;;  %v314_v24 = vld [vmem:[#allocation5 + $0x98] sm:$0xff] }
  0x97   :  { %v100_v21 = vpop.f32.mrf.mxu2  ;;  %335 = vmatpush.msrb.mxu2 %v314_v24 }
  0x98   :  { %v106_v22 = vadd.f32 %v100_v21, %v56_v20 }
  0x99   :  { %v94_v13 = vpop.f32.mrf.mxu0 }
  0x9a   :  { %v104_v14 = vadd.f32 %v94_v13, %v54_v12  ;;  %v186_v23 = vsub.f32 %v106_v22, %v1500_v5  ;;  %v1258_v32 = vmul.f32 -1.442695, %v106_v22 }
  0x9c   :  { %v184_v15 = vsub.f32 %v104_v14, %v1506_v6  ;;  %v1256_v25 = vmul.f32 -1.442695, %v104_v14  ;;  %v1325_v26 = vpop.eup %1324 }
  0x9d   :  { %v119_v27 = vadd.f32 1.0, %v1325_v26  ;;  %v312_v26 = vld [vmem:[#allocation5 + $0x88] sm:$0xff] }
  0x9e   :  { %193 = vrot.lane.b32.xlu1 %v184_v15, %s1474_s0  ;;  %1326 = vpow2.f32 %v1256_v25  ;;  %v313_v25 = vld [vmem:[#allocation5 + $0x90] sm:$0xff] }
  0x9f   :  { %1328 = vrcp.f32 %v119_v27  ;;  %v134_v45 = vand.u32 2147483648, %v119_v27  ;;  %vm128_vm2 = vweird.f32 %v119_v27  ;;  %v132_v46 = vand.u32 2147483647, %v119_v27  ;;  %336 = vmatpush.msrb.mxu2 %v313_v25 }
  0xa1   :  { %v97_v17 = vpop.f32.mrf.mxu0  ;;  %v135_v50 = vor.u32 1.1754944e-38, %v134_v45  ;;  %vm133_vm4 = vcmp.eq.f32.partialorder %v132_v46, 8.507059e+37  ;;  %337 = vmatpush.msrb.mxu2 %v312_v26 }
  0xa2   :  { %v105_v18 = vadd.f32 %v97_v17, %v55_v16 }
  0xa4   :  { %v185_v19 = vsub.f32 %v105_v18, %v1510_v7  ;;  %v1257_v28 = vmul.f32 -1.442695, %v105_v18  ;;  %v1327_v29 = vpop.eup %1326 }
  0xa5   :  { %v120_v30 = vadd.f32 1.0, %v1327_v29  ;;  %v1329_v31 = vpop.eup %1328  ;;  %v237_v29 = vld [vmem:[#allocation5 + $0x70] sm:$0xff] }
  0xa6   :  { %195 = vrot.lane.b32.xlu0 %v185_v19, %s1474_s0  ;;  %1330 = vpow2.f32 %v1257_v28  ;;  %v124_v34 = vmul.f32 %v1329_v31, %v119_v27  ;;  %vm129_vm1 = vweird.f32 %v1329_v31  ;;  %v238_v27 = vld [vmem:[#allocation5 + $0x78] sm:$0xff]  ;;  %v311_v28 = vld [vmem:[#allocation5 + $0x80] sm:$0xff] }
  0xa7   :  { %1332 = vrcp.f32 %v120_v30  ;;  %vm130_vm3 = vmor %vm128_vm2, %vm129_vm1  ;;  %v149_v57 = vand.u32 2147483648, %v120_v30  ;;  %vm143_vm6 = vweird.f32 %v120_v30  ;;  %v147_v58 = vand.u32 2147483647, %v120_v30  ;;  %290 = vmatpush.msra.mxu1 %v238_v27  ;;  %1313 = vmatpush.msra.mxu3 %v238_v27  ;;  %v232_v27 = vld [vmem:[#allocation5 + $0x1a8] sm:$0xff] }
  0xa8   :  { %1334 = vpow2.f32 %v1258_v32  ;;  %v125_v36 = vsub.f32 1.0, %v124_v34  ;;  %338 = vmatpush.msrb.mxu2 %v311_v28  ;;  %v359_v32 = vld [vmem:[#allocation5 + $0xb8] sm:$0xff]  ;;  %v357_v34 = vld [vmem:[#allocation5 + $0xa8] sm:$0xff]  ;;  %vm245_vm2 = vcmask 1040384  }
  0xa9   :  { %v150_v62 = vor.u32 1.1754944e-38, %v149_v57  ;;  %vm148_vm8 = vcmp.eq.f32.partialorder %v147_v58, 8.507059e+37  ;;  %291 = vmatpush.msra.mxu1 %v237_v29  ;;  %1314 = vmatpush.msra.mxu3 %v237_v29 }
  0xaa   :  { %v126_v39 = vmul.f32 %v1329_v31, %v125_v36 }
  0xac   :  { %v1331_v33 = vpop.eup %1330  ;;  %v127_v42 = vadd.f32 %v1329_v31, %v126_v39  ;;  %v1529_v39 = vld [vmem:[#allocation2 + $0x20] sm:$0xff] }
  0xad   :  { %v121_v35 = vadd.f32 1.0, %v1331_v33  ;;  %v1333_v37 = vpop.eup %1332  ;;  %v358_v33 = vld [vmem:[#allocation5 + $0xb0] sm:$0xff] }
  0xae   :  { %197 = vrot.lane.b32.xlu0 %v186_v23, %s1474_s0  ;;  %v1335_v38 = vpop.eup %1334  ;;  %v139_v40 = vmul.f32 %v1333_v37, %v120_v30  ;;  %v131_v47 = vsel %vm130_vm3, %v1329_v31, %v127_v42  ;;  %vm144_vm5 = vweird.f32 %v1333_v37  ;;  %v236_v30 = vld [vmem:[#allocation5 + $0x68] sm:$0xff]  ;;  %v235_v31 = vld [vmem:[#allocation5 + $0x60] sm:$0xff]  ;;  %vm360_vm3 = vcmask 1046528  }
  0xaf   :  { %1336 = vrcp.f32 %v121_v35  ;;  %v122_v41 = vadd.f32 1.0, %v1335_v38  ;;  %v136_v52 = vsel %vm133_vm4, %v135_v50, %v131_v47  ;;  %vm145_vm7 = vmor %vm143_vm6, %vm144_vm5  ;;  %v164_v8 = vand.u32 2147483648, %v121_v35  ;;  %292 = vmatpush.msra.mxu1 %v236_v30  ;;  %1315 = vmatpush.msra.mxu3 %v236_v30  ;;  %v1527_v38 = vld [vmem:[#allocation2 + $0x30] sm:$0xff] }
  0xb0   :  { %v140_v43 = vsub.f32 1.0, %v139_v40  ;;  %vm158_vm10 = vweird.f32 %v121_v35  ;;  %v162_v9 = vand.u32 2147483647, %v121_v35 }
  0xb1   :  { %1338 = vrcp.f32 %v122_v41  ;;  %v165_v12 = vor.u32 1.1754944e-38, %v164_v8  ;;  %vm173_vm13 = vweird.f32 %v122_v41  ;;  %v179_v15 = vand.u32 2147483648, %v122_v41  ;;  %293 = vmatpush.msra.mxu1 %v235_v31  ;;  %1316 = vmatpush.msra.mxu3 %v235_v31  ;;  %v260_v8 = vld [vmem:[#allocation2 + $0x50] sm:$0xff] }
  0xb2   :  { %v141_v48 = vmul.f32 %v1333_v37, %v140_v43  ;;  %vm163_vm12 = vcmp.eq.f32.partialorder %v162_v9, 8.507059e+37  ;;  %v177_v18 = vand.u32 2147483647, %v122_v41 }
  0xb3   :  { %v180_v19 = vor.u32 1.1754944e-38, %v179_v15  ;;  %407 = vmatpush.msrb.mxu3 %v359_v32  ;;  %v377_v15 = vld [vmem:[#allocation2 + $0x70] sm:$0xff] }
  0xb4   :  { %v142_v54 = vadd.f32 %v1333_v37, %v141_v48  ;;  %vm178_vm1 = vcmp.eq.f32.partialorder %v177_v18, 8.507059e+37  ;;  %v378_v18 = vld [vmem:[#allocation2 + $0x78] sm:$0xff] }
  0xb5   :  { %v1337_v44 = vpop.eup %1336  ;;  %408 = vmatpush.msrb.mxu3 %v358_v33 }
  0xb6   :  { %v154_v49 = vmul.f32 %v1337_v44, %v121_v35  ;;  %v146_v59 = vsel %vm145_vm7, %v1333_v37, %v142_v54  ;;  %vm159_vm9 = vweird.f32 %v1337_v44  ;;  %v356_v35 = vld [vmem:[#allocation5 + $0xa0] sm:$0xff] }
  0xb7   :  { %v1339_v56 = vpop.eup %1338  ;;  %v151_v0 = vsel %vm148_vm8, %v150_v62, %v146_v59  ;;  %vm160_vm11 = vmor %vm158_vm10, %vm159_vm9  ;;  %409 = vmatpush.msrb.mxu3 %v357_v34  ;;  %v259_v59 = vld [vmem:[#allocation2 + $0x48] sm:$0xff]  ;;  %v375_v62 = vld [vmem:[#allocation2 + $0x60] sm:$0xff] }
  0xb8   :  { %v155_v55 = vsub.f32 1.0, %v154_v49  ;;  %v169_v61 = vmul.f32 %v1339_v56, %v122_v41  ;;  %vm174_vm14 = vweird.f32 %v1339_v56  ;;  %v1531_v41 = vld [vmem:[#allocation2 + $0x38] sm:$0xff]  ;;  %v258_v49 = vld [vmem:[#allocation2 + $0x40] sm:$0xff]  ;;  %v233_v34 = vld [vmem:[#allocation5 + $0x1b0] sm:$0xff] }
  0xb9   :  { %vm175_vm15 = vmor %vm173_vm13, %vm174_vm14  ;;  %410 = vmatpush.msrb.mxu3 %v356_v35 }
  0xba   :  { %v156_v60 = vmul.f32 %v1337_v44, %v155_v55  ;;  %v170_v3 = vsub.f32 1.0, %v169_v61 }
  0xbc   :  { %v157_v2 = vadd.f32 %v1337_v44, %v156_v60  ;;  %v171_v11 = vmul.f32 %v1339_v56, %v170_v3 }
  0xbe   :  { %v161_v10 = vsel %vm160_vm11, %v1337_v44, %v157_v2  ;;  %v172_v17 = vadd.f32 %v1339_v56, %v171_v11 }
  0xbf   :  { %v166_v14 = vsel %vm163_vm12, %v165_v12, %v161_v10  ;;  %v376_v10 = vld [vmem:[#allocation2 + $0x68] sm:$0xff] }
  0xc0   :  { %v176_v20 = vsel %vm175_vm15, %v1339_v56, %v172_v17 }
  0xc1   :  { %v181_v21 = vsel %vm178_vm1, %v180_v19, %v176_v20 }
 0x108   :  { %v192_v51 = vpop.permute.xlu1 %191 }
 0x109   :  { %v203_v53 = vmul.f32 %v192_v51, %v136_v52  ;;  %v1551_v52 = vld [vmem:[#allocation2 + $0x28] sm:$0xff] }
 0x10b   :  { %211 = vrot.lane.b32.xlu0 %v203_v53, %s1475_s1 }
 0x110   :  { %v194_v63 = vpop.permute.xlu1 %193 }
 0x111   :  { %v204_v1 = vmul.f32 %v194_v63, %v151_v0 }
 0x113   :  { %213 = vrot.lane.b32.xlu1 %v204_v1, %s1475_s1 }
 0x118   :  { %v196_v13 = vpop.permute.xlu0 %195 }
 0x119   :  { %v205_v16 = vmul.f32 %v196_v13, %v166_v14 }
 0x11b   :  { %215 = vrot.lane.b32.xlu2 %v205_v16, %s1475_s1 }
 0x120   :  { %v198_v22 = vpop.permute.xlu0 %197 }
 0x121   :  { %v206_v23 = vmul.f32 %v198_v22, %v181_v21  ;;  %v231_v22 = vld [vmem:[#allocation5 + $0x1a0] sm:$0xff] }
 0x123   :  { %217 = vrot.lane.b32.xlu2 %v206_v23, %s1475_s1 }
 0x175   :  { %v216_v36 = vpop.permute.xlu2 %215 }
 0x176   :  { %v225_v37 = vadd.f32 %v216_v36, %v1510_v7 }
 0x178   :  { %v1534_v43 = vmul.f32 %v225_v37, %v1527_v38 }
 0x17a   :  { %v249_v50 = vrot.slane %v1534_v43, 7  ;;  %v364_v2 = vrot.slane %v1534_v43, 1 }
 0x17d   :  { %v212_v40 = vpop.permute.xlu0 %211  ;;  %v218_v42 = vpop.permute.xlu2 %217 }
 0x17e   :  { %v223_v44 = vadd.f32 %v212_v40, %v1498_v4  ;;  %v226_v45 = vadd.f32 %v218_v42, %v1500_v5  ;;  %v261_v4 = vld [vmem:[#allocation2 + $0x58] sm:$0xff] }
 0x180   :  { %v1539_v46 = vmul.f32 %v223_v44, %v1529_v39  ;;  %v1542_v7 = vmul.f32 %v226_v45, %v1531_v41 }
 0x182   :  { %1263 = vmatmul.msk.f32.vlgmr.msrb.gmra.mxu2 %vm61_vm0, %v1539_v46  ;;  %v240_v47 = vrot.slane %v1542_v7, 7  ;;  %v246_v48 = vrot.slane %v1539_v46, 7  ;;  %v361_v60 = vrot.slane %v1539_v46, 1  ;;  %v366_v13 = vrot.slane %v1542_v7, 1 }
 0x184   :  { %v256_v5 = vsel %vm245_vm2, %v240_v47, %v246_v48  ;;  %v251_v51 = vsel %vm245_vm2, %v249_v50, %v240_v47  ;;  %v367_v14 = vsel %vm360_vm3, %v364_v2, %v366_v13  ;;  %v373_v17 = vsel %vm360_vm3, %v366_v13, %v361_v60 }
 0x185   :  { %v214_v53 = vpop.permute.xlu1 %213  ;;  %v262_v54 = vmul.f32 %v258_v49, %v256_v5  ;;  %v265_v55 = vmul.f32 %v261_v4, %v251_v51  ;;  %v381_v16 = vmul.f32 %v377_v15, %v367_v14  ;;  %v382_v19 = vmul.f32 %v378_v18, %v373_v17  ;;  %v234_v49 = vld [vmem:[#allocation5 + $0x1b8] sm:$0xff] }
 0x186   :  { %v224_v56 = vadd.f32 %v214_v53, %v1506_v6 }
 0x187   :  { %1259 = vmatmul.msk.f32.vlgmr.msra.gmra.mxu1 %vm61_vm0, %v262_v54  ;;  %1262 = vmatmul.msk.f32.vlgmr.msra.gmra.mxu3 %vm61_vm0, %v265_v55 }
 0x188   :  { %v1557_v57 = vmul.f32 %v224_v56, %v1551_v52 }
 0x18a   :  { %1264 = vmatmul.msk.f32.gmra.mxu2 %vm61_vm0, %v1557_v57  ;;  %v247_v58 = vrot.slane %v1557_v57, 7  ;;  %v362_v61 = vrot.slane %v1557_v57, 1 }
 0x18c   :  { %v248_v6 = vsel %vm245_vm2, %v246_v48, %v247_v58  ;;  %v363_v63 = vsel %vm360_vm3, %v361_v60, %v362_v61  ;;  %v250_v3 = vsel %vm245_vm2, %v247_v58, %v249_v50  ;;  %v365_v9 = vsel %vm360_vm3, %v362_v61, %v364_v2 }
 0x18d   :  { %v263_v0 = vmul.f32 %v259_v59, %v248_v6  ;;  %v379_v1 = vmul.f32 %v375_v62, %v363_v63  ;;  %v264_v11 = vmul.f32 %v260_v8, %v250_v3  ;;  %v380_v12 = vmul.f32 %v376_v10, %v365_v9 }
 0x18f   :  { %1260 = vmatmul.msk.f32.gmra.mxu1 %vm61_vm0, %v263_v0  ;;  %1267 = vmatmul.msk.f32.vlgmr.msrb.gmra.mxu3 %vm61_vm0, %v379_v1 }
 0x192   :  { %1265 = vmatmul.msk.f32.gmra.mxu2 %vm61_vm0, %v1534_v43 }
 0x197   :  { %1261 = vmatmul.msk.f32.gmra.mxu1 %vm61_vm0, %v264_v11  ;;  %1268 = vmatmul.msk.f32.gmra.mxu3 %vm61_vm0, %v380_v12 }
 0x19a   :  { %1266 = vmatmul.msk.f32.gmra.mxu2 %vm61_vm0, %v1542_v7 }
 0x19f   :  { %1269 = vmatmul.msk.f32.gmra.mxu3 %vm61_vm0, %v381_v16 }
 0x1a7   :  { %1270 = vmatmul.msk.f32.gmra.mxu3 %vm61_vm0, %v382_v19 }
 0x204   :  { %v295_v20 = vpop.f32.mrf.mxu1 }
 0x205   :  { %v340_v21 = vpop.f32.mrf.mxu2  ;;  %v307_v24 = vadd.f32 %v295_v20, %v231_v22 }
 0x207   :  { %v352_v26 = vadd.f32 %v340_v21, %v307_v24 }
 0x20a   :  { %v304_v23 = vpop.f32.mrf.mxu3 }
 0x20b   :  { %v310_v5 = vadd.f32 %v304_v23, %v234_v49 }
 0x20c   :  { %v298_v25 = vpop.f32.mrf.mxu1 }
 0x20d   :  { %v343_v28 = vpop.f32.mrf.mxu2  ;;  %v308_v31 = vadd.f32 %v298_v25, %v232_v27 }
 0x20f   :  { %v353_v33 = vadd.f32 %v343_v28, %v308_v31 }
 0x212   :  { %v412_v29 = vpop.f32.mrf.mxu3 }
 0x213   :  { %v424_v30 = vadd.f32 %v412_v29, %v352_v26 }
 0x214   :  { %v301_v35 = vpop.f32.mrf.mxu1 }
 0x215   :  { %v504_v32 = vsub.f32 %v424_v30, %v1539_v46  ;;  %v346_v40 = vpop.f32.mrf.mxu2  ;;  %v309_v42 = vadd.f32 %v301_v35, %v233_v34  ;;  %v1271_v56 = vmul.f32 -1.442695, %v424_v30  ;;  %v635_v35 = vld [vmem:[#allocation5 + $0xf8] sm:$0xff] }
 0x216   :  { %656 = vmatpush.msrb.mxu1 %v635_v35 }
 0x217   :  { %512 = vrot.lane.b32.xlu2 %v504_v32, %s1474_s0  ;;  %v354_v45 = vadd.f32 %v346_v40, %v309_v42  ;;  %1340 = vpow2.f32 %v1271_v56 }
 0x21a   :  { %v415_v36 = vpop.f32.mrf.mxu3 }
 0x21b   :  { %v425_v37 = vadd.f32 %v415_v36, %v353_v33  ;;  %v634_v36 = vld [vmem:[#allocation5 + $0xf0] sm:$0xff] }
 0x21c   :  { %657 = vmatpush.msrb.mxu1 %v634_v36 }
 0x21d   :  { %v505_v44 = vsub.f32 %v425_v37, %v1557_v57  ;;  %v349_v4 = vpop.f32.mrf.mxu2  ;;  %v1341_v58 = vpop.eup %1340  ;;  %v1272_v1 = vmul.f32 -1.442695, %v425_v37 }
 0x21e   :  { %v355_v51 = vadd.f32 %v349_v4, %v310_v5  ;;  %v440_v59 = vadd.f32 1.0, %v1341_v58 }
 0x21f   :  { %514 = vrot.lane.b32.xlu0 %v505_v44, %s1474_s0 }
 0x220   :  { %1342 = vrcp.f32 %v440_v59  ;;  %v455_v9 = vand.u32 2147483648, %v440_v59  ;;  %vm449_vm5 = vweird.f32 %v440_v59  ;;  %v453_v10 = vand.u32 2147483647, %v440_v59 }
 0x222   :  { %v418_v47 = vpop.f32.mrf.mxu3  ;;  %v456_v14 = vor.u32 1.1754944e-38, %v455_v9  ;;  %vm454_vm7 = vcmp.eq.f32.partialorder %v453_v10, 8.507059e+37  ;;  %v556_v9 = vld [vmem:[#allocation5 + $0xc0] sm:$0xff] }
 0x223   :  { %v426_v48 = vadd.f32 %v418_v47, %v354_v45 }
 0x225   :  { %v506_v50 = vsub.f32 %v426_v48, %v1534_v43  ;;  %v1273_v60 = vmul.f32 -1.442695, %v426_v48 }
 0x226   :  { %v1343_v61 = vpop.eup %1342 }
 0x227   :  { %516 = vrot.lane.b32.xlu2 %v506_v50, %s1474_s0  ;;  %1344 = vpow2.f32 %v1273_v60  ;;  %v445_v6 = vmul.f32 %v1343_v61, %v440_v59  ;;  %vm450_vm4 = vweird.f32 %v1343_v61 }
 0x228   :  { %vm451_vm6 = vmor %vm449_vm5, %vm450_vm4  ;;  %vm566_vm5 = vcmask 1041408  }
 0x229   :  { %v446_v0 = vsub.f32 1.0, %v445_v6  ;;  %v633_v6 = vld [vmem:[#allocation5 + $0xe8] sm:$0xff] }
 0x22a   :  { %v421_v53 = vpop.f32.mrf.mxu3  ;;  %658 = vmatpush.msrb.mxu1 %v633_v6  ;;  %v553_v6 = vld [vmem:[#allocation5 + $0x1c8] sm:$0xff] }
 0x22b   :  { %v427_v54 = vadd.f32 %v421_v53, %v355_v51  ;;  %v447_v2 = vmul.f32 %v1343_v61, %v446_v0  ;;  %v559_v0 = vld [vmem:[#allocation5 + $0xd8] sm:$0xff] }
 0x22c   :  { %611 = vmatpush.msrb.mxu0 %v559_v0 }
 0x22d   :  { %v507_v55 = vsub.f32 %v427_v54, %v1542_v7  ;;  %v1345_v62 = vpop.eup %1344  ;;  %v448_v3 = vadd.f32 %v1343_v61, %v447_v2  ;;  %v1274_v20 = vmul.f32 -1.442695, %v427_v54  ;;  %v557_v2 = vld [vmem:[#allocation5 + $0xc8] sm:$0xff] }
 0x22e   :  { %v442_v63 = vadd.f32 1.0, %v1345_v62 }
 0x22f   :  { %518 = vrot.lane.b32.xlu1 %v507_v55, %s1474_s0  ;;  %v452_v12 = vsel %vm451_vm6, %v1343_v61, %v448_v3  ;;  %vm681_vm6 = vcmask 1045504  }
 0x230   :  { %1346 = vrcp.f32 %v442_v63  ;;  %v457_v17 = vsel %vm454_vm7, %v456_v14, %v452_v12  ;;  %v485_v24 = vand.u32 2147483648, %v442_v63  ;;  %vm479_vm9 = vweird.f32 %v442_v63  ;;  %v679_v12 = vld [vmem:[#allocation5 + $0x110] sm:$0xff]  ;;  %v677_v14 = vld [vmem:[#allocation5 + $0x100] sm:$0xff] }
 0x231   :  { %1348 = vpow2.f32 %v1272_v1  ;;  %v483_v25 = vand.u32 2147483647, %v442_v63  ;;  %v558_v1 = vld [vmem:[#allocation5 + $0xd0] sm:$0xff] }
 0x232   :  { %v486_v29 = vor.u32 1.1754944e-38, %v485_v24  ;;  %612 = vmatpush.msrb.mxu0 %v558_v1 }
 0x233   :  { %vm484_vm11 = vcmp.eq.f32.partialorder %v483_v25, 8.507059e+37 }
 0x234   :  { %613 = vmatpush.msrb.mxu0 %v557_v2 }
 0x236   :  { %v1347_v8 = vpop.eup %1346  ;;  %614 = vmatpush.msrb.mxu0 %v556_v9 }
 0x237   :  { %v1349_v11 = vpop.eup %1348  ;;  %v475_v13 = vmul.f32 %v1347_v8, %v442_v63  ;;  %vm480_vm8 = vweird.f32 %v1347_v8  ;;  %v632_v63 = vld [vmem:[#allocation5 + $0xe0] sm:$0xff] }
 0x238   :  { %v441_v15 = vadd.f32 1.0, %v1349_v11  ;;  %vm481_vm10 = vmor %vm479_vm9, %vm480_vm8  ;;  %659 = vmatpush.msrb.mxu1 %v632_v63  ;;  %v680_v11 = vld [vmem:[#allocation5 + $0x118] sm:$0xff] }
 0x239   :  { %v476_v19 = vsub.f32 1.0, %v475_v13  ;;  %728 = vmatpush.msra.mxu2 %v680_v11  ;;  %v678_v13 = vld [vmem:[#allocation5 + $0x108] sm:$0xff]  ;;  %v554_v11 = vld [vmem:[#allocation5 + $0x1d0] sm:$0xff] }
 0x23a   :  { %1350 = vrcp.f32 %v441_v15  ;;  %v470_v44 = vand.u32 2147483648, %v441_v15  ;;  %vm464_vm13 = vweird.f32 %v441_v15  ;;  %v468_v45 = vand.u32 2147483647, %v441_v15 }
 0x23b   :  { %v477_v21 = vmul.f32 %v1347_v8, %v476_v19  ;;  %1352 = vpow2.f32 %v1274_v20  ;;  %729 = vmatpush.msra.mxu2 %v679_v12  ;;  %v579_v19 = vld [vmem:[#allocation2 + $0x80] sm:$0xff] }
 0x23c   :  { %v471_v49 = vor.u32 1.1754944e-38, %v470_v44  ;;  %vm469_vm15 = vcmp.eq.f32.partialorder %v468_v45, 8.507059e+37 }
 0x23d   :  { %v478_v22 = vadd.f32 %v1347_v8, %v477_v21  ;;  %730 = vmatpush.msra.mxu2 %v678_v13 }
 0x23f   :  { %v482_v27 = vsel %vm481_vm10, %v1347_v8, %v478_v22  ;;  %731 = vmatpush.msra.mxu2 %v677_v14 }
 0x240   :  { %v1351_v23 = vpop.eup %1350  ;;  %v487_v32 = vsel %vm484_vm11, %v486_v29, %v482_v27  ;;  %v580_v29 = vld [vmem:[#allocation2 + $0x88] sm:$0xff] }
 0x241   :  { %v1353_v26 = vpop.eup %1352  ;;  %v460_v28 = vmul.f32 %v1351_v23, %v441_v15  ;;  %vm465_vm12 = vweird.f32 %v1351_v23 }
 0x242   :  { %v443_v30 = vadd.f32 1.0, %v1353_v26  ;;  %vm466_vm14 = vmor %vm464_vm13, %vm465_vm12 }
 0x243   :  { %v461_v34 = vsub.f32 1.0, %v460_v28 }
 0x244   :  { %1354 = vrcp.f32 %v443_v30  ;;  %v500_v55 = vand.u32 2147483648, %v443_v30  ;;  %vm494_vm2 = vweird.f32 %v443_v30  ;;  %v498_v56 = vand.u32 2147483647, %v443_v30 }
 0x245   :  { %v462_v37 = vmul.f32 %v1351_v23, %v461_v34 }
 0x246   :  { %v501_v59 = vor.u32 1.1754944e-38, %v500_v55  ;;  %vm499_vm4 = vcmp.eq.f32.partialorder %v498_v56, 8.507059e+37 }
 0x247   :  { %v463_v40 = vadd.f32 %v1351_v23, %v462_v37  ;;  %v581_v37 = vld [vmem:[#allocation2 + $0x90] sm:$0xff] }
 0x249   :  { %v467_v47 = vsel %vm466_vm14, %v1351_v23, %v463_v40 }
 0x24a   :  { %v1355_v42 = vpop.eup %1354  ;;  %v472_v4 = vsel %vm469_vm15, %v471_v49, %v467_v47  ;;  %v582_v49 = vld [vmem:[#allocation2 + $0x98] sm:$0xff] }
 0x24b   :  { %v490_v48 = vmul.f32 %v1355_v42, %v443_v30  ;;  %vm495_vm1 = vweird.f32 %v1355_v42  ;;  %v696_v30 = vld [vmem:[#allocation2 + $0xa0] sm:$0xff] }
 0x24c   :  { %vm496_vm3 = vmor %vm494_vm2, %vm495_vm1 }
 0x24d   :  { %v491_v51 = vsub.f32 1.0, %v490_v48 }
 0x24f   :  { %v492_v53 = vmul.f32 %v1355_v42, %v491_v51 }
 0x251   :  { %v493_v54 = vadd.f32 %v1355_v42, %v492_v53 }
 0x253   :  { %v497_v58 = vsel %vm496_vm3, %v1355_v42, %v493_v54  ;;  %v697_v42 = vld [vmem:[#allocation2 + $0xa8] sm:$0xff]  ;;  %v699_v54 = vld [vmem:[#allocation2 + $0xb8] sm:$0xff] }
 0x254   :  { %v502_v61 = vsel %vm499_vm4, %v501_v59, %v497_v58  ;;  %v552_v58 = vld [vmem:[#allocation5 + $0x1c0] sm:$0xff] }
 0x271   :  { %v513_v16 = vpop.permute.xlu2 %512 }
 0x272   :  { %v524_v18 = vmul.f32 %v513_v16, %v457_v17 }
 0x274   :  { %532 = vrot.lane.b32.xlu0 %v524_v18, %s1475_s1 }
 0x281   :  { %v517_v31 = vpop.permute.xlu2 %516 }
 0x282   :  { %v526_v33 = vmul.f32 %v517_v31, %v487_v32 }
 0x284   :  { %536 = vrot.lane.b32.xlu0 %v526_v33, %s1475_s1 }
 0x291   :  { %v515_v50 = vpop.permute.xlu0 %514 }
 0x292   :  { %v525_v5 = vmul.f32 %v515_v50, %v472_v4  ;;  %v698_v4 = vld [vmem:[#allocation2 + $0xb0] sm:$0xff] }
 0x294   :  { %534 = vrot.lane.b32.xlu1 %v525_v5, %s1475_s1 }
 0x2a1   :  { %v519_v60 = vpop.permute.xlu1 %518 }
 0x2a2   :  { %v527_v62 = vmul.f32 %v519_v60, %v502_v61 }
 0x2a4   :  { %538 = vrot.lane.b32.xlu2 %v527_v62, %s1475_s1 }
 0x2e6   :  { %v533_v3 = vpop.permute.xlu0 %532 }
 0x2e7   :  { %v544_v8 = vadd.f32 %v533_v3, %v1539_v46 }
 0x2e9   :  { %v1596_v10 = vmul.f32 %v544_v8, %v1529_v39 }
 0x2eb   :  { %1279 = vmatmul.msk.f32.vlgmr.msrb.gmra.mxu1 %vm61_vm0, %v1596_v10  ;;  %v567_v18 = vrot.slane %v1596_v10, 6  ;;  %v682_v26 = vrot.slane %v1596_v10, 2 }
 0x2f6   :  { %v537_v21 = vpop.permute.xlu0 %536 }
 0x2fe   :  { %v539_v15 = vpop.permute.xlu2 %538 }
 0x2ff   :  { %v547_v16 = vadd.f32 %v539_v15, %v1542_v7  ;;  %v546_v7 = vadd.f32 %v537_v21, %v1534_v43 }
 0x301   :  { %v1602_v46 = vmul.f32 %v547_v16, %v1531_v41 }
 0x303   :  { %v561_v17 = vrot.slane %v1602_v46, 6  ;;  %v687_v47 = vrot.slane %v1602_v46, 2 }
 0x305   :  { %v577_v20 = vsel %vm566_vm5, %v561_v17, %v567_v18  ;;  %v694_v53 = vsel %vm681_vm6, %v687_v47, %v682_v26 }
 0x306   :  { %v535_v22 = vpop.permute.xlu1 %534  ;;  %v583_v23 = vmul.f32 %v579_v19, %v577_v20  ;;  %v703_v55 = vmul.f32 %v699_v54, %v694_v53 }
 0x307   :  { %v545_v24 = vadd.f32 %v535_v22, %v1557_v57  ;;  %v1619_v57 = vmul.f32 %v546_v7, %v1527_v38 }
 0x308   :  { %1275 = vmatmul.msk.f32.vlgmr.msrb.gmra.mxu0 %vm61_vm0, %v583_v23 }
 0x309   :  { %v1611_v25 = vmul.f32 %v545_v24, %v1551_v52  ;;  %v570_v34 = vrot.slane %v1619_v57, 6  ;;  %v685_v35 = vrot.slane %v1619_v57, 2 }
 0x30b   :  { %v683_v27 = vrot.slane %v1611_v25, 2  ;;  %1280 = vmatmul.msk.f32.gmra.mxu1 %vm61_vm0, %v1611_v25  ;;  %v568_v28 = vrot.slane %v1611_v25, 6  ;;  %v572_v48 = vsel %vm566_vm5, %v570_v34, %v561_v17  ;;  %v688_v50 = vsel %vm681_vm6, %v685_v35, %v687_v47 }
 0x30c   :  { %v586_v5 = vmul.f32 %v582_v49, %v572_v48  ;;  %v702_v51 = vmul.f32 %v698_v4, %v688_v50 }
 0x30d   :  { %v569_v43 = vsel %vm566_vm5, %v567_v18, %v568_v28  ;;  %v684_v31 = vsel %vm681_vm6, %v682_v26, %v683_v27  ;;  %v571_v36 = vsel %vm566_vm5, %v568_v28, %v570_v34  ;;  %v686_v40 = vsel %vm681_vm6, %v683_v27, %v685_v35  ;;  %v555_v18 = vld [vmem:[#allocation5 + $0x1d8] sm:$0xff] }
 0x30e   :  { %v584_v32 = vmul.f32 %v580_v29, %v569_v43  ;;  %v700_v33 = vmul.f32 %v696_v30, %v684_v31  ;;  %v585_v44 = vmul.f32 %v581_v37, %v571_v36  ;;  %v701_v45 = vmul.f32 %v697_v42, %v686_v40 }
 0x310   :  { %1276 = vmatmul.msk.f32.gmra.mxu0 %vm61_vm0, %v584_v32  ;;  %1283 = vmatmul.msk.f32.vlgmr.msra.gmra.mxu2 %vm61_vm0, %v700_v33 }
 0x313   :  { %1281 = vmatmul.msk.f32.gmra.mxu1 %vm61_vm0, %v1619_v57 }
 0x318   :  { %1277 = vmatmul.msk.f32.gmra.mxu0 %vm61_vm0, %v585_v44  ;;  %1284 = vmatmul.msk.f32.gmra.mxu2 %vm61_vm0, %v701_v45 }
 0x31b   :  { %1282 = vmatmul.msk.f32.gmra.mxu1 %vm61_vm0, %v1602_v46 }
 0x320   :  { %1278 = vmatmul.msk.f32.gmra.mxu0 %vm61_vm0, %v586_v5  ;;  %1285 = vmatmul.msk.f32.gmra.mxu2 %vm61_vm0, %v702_v51  ;;  %v956_v5 = vld [vmem:[#allocation5 + $0x158] sm:$0xff]  ;;  %v955_v51 = vld [vmem:[#allocation5 + $0x150] sm:$0xff] }
 0x321   :  { %977 = vmatpush.msra.mxu0 %v956_v5 }
 0x323   :  { %978 = vmatpush.msra.mxu0 %v955_v51 }
 0x328   :  { %1286 = vmatmul.msk.f32.gmra.mxu2 %vm61_vm0, %v703_v55 }
 0x368   :  { %v661_v59 = vpop.f32.mrf.mxu1 }
 0x385   :  { %v616_v56 = vpop.f32.mrf.mxu0 }
 0x386   :  { %v628_v60 = vadd.f32 %v616_v56, %v552_v58 }
 0x388   :  { %v673_v62 = vadd.f32 %v661_v59, %v628_v60  ;;  %v664_v1 = vpop.f32.mrf.mxu1 }
 0x38d   :  { %v619_v61 = vpop.f32.mrf.mxu0 }
 0x38e   :  { %v629_v2 = vadd.f32 %v619_v61, %v553_v6 }
 0x390   :  { %v674_v9 = vadd.f32 %v664_v1, %v629_v2  ;;  %v667_v16 = vpop.f32.mrf.mxu1 }
 0x393   :  { %v733_v63 = vpop.f32.mrf.mxu2 }
 0x394   :  { %v745_v0 = vadd.f32 %v733_v63, %v673_v62 }
 0x395   :  { %v622_v8 = vpop.f32.mrf.mxu0 }
 0x396   :  { %v825_v3 = vsub.f32 %v745_v0, %v1596_v10  ;;  %v630_v14 = vadd.f32 %v622_v8, %v554_v11  ;;  %v1287_v29 = vmul.f32 -1.442695, %v745_v0 }
 0x398   :  { %833 = vrot.lane.b32.xlu1 %v825_v3, %s1474_s0  ;;  %v675_v17 = vadd.f32 %v667_v16, %v630_v14  ;;  %v670_v24 = vpop.f32.mrf.mxu1  ;;  %1356 = vpow2.f32 %v1287_v29 }
 0x39b   :  { %v736_v12 = vpop.f32.mrf.mxu2 }
 0x39c   :  { %v746_v13 = vadd.f32 %v736_v12, %v674_v9 }
 0x39d   :  { %v625_v19 = vpop.f32.mrf.mxu0 }
 0x39e   :  { %v826_v15 = vsub.f32 %v746_v13, %v1611_v25  ;;  %v631_v22 = vadd.f32 %v625_v19, %v555_v18  ;;  %v1288_v43 = vmul.f32 -1.442695, %v746_v13  ;;  %v1357_v31 = vpop.eup %1356 }
 0x39f   :  { %v761_v33 = vadd.f32 1.0, %v1357_v31 }
 0x3a0   :  { %835 = vrot.lane.b32.xlu0 %v826_v15, %s1474_s0  ;;  %v676_v7 = vadd.f32 %v670_v24, %v631_v22 }
 0x3a1   :  { %vm770_vm9 = vweird.f32 %v761_v33  ;;  %v776_v61 = vand.u32 2147483648, %v761_v33  ;;  %v774_v6 = vand.u32 2147483647, %v761_v33 }
 0x3a3   :  { %v739_v20 = vpop.f32.mrf.mxu2  ;;  %v777_v8 = vor.u32 1.1754944e-38, %v776_v61  ;;  %vm775_vm13 = vcmp.eq.f32.partialorder %v774_v6, 8.507059e+37  ;;  %v1003_v6 = vld [vmem:[#allocation2 + $0xe0] sm:$0xff] }
 0x3a4   :  { %v747_v21 = vadd.f32 %v739_v20, %v675_v17 }
 0x3a6   :  { %v827_v23 = vsub.f32 %v747_v21, %v1619_v57  ;;  %v1289_v35 = vmul.f32 -1.442695, %v747_v21 }
 0x3a8   :  { %837 = vrot.lane.b32.xlu1 %v827_v23, %s1474_s0 }
 0x3ab   :  { %v742_v26 = vpop.f32.mrf.mxu2 }
 0x3ac   :  { %v748_v27 = vadd.f32 %v742_v26, %v676_v7 }
 0x3ae   :  { %v828_v28 = vsub.f32 %v748_v27, %v1602_v46  ;;  %v1290_v30 = vmul.f32 -1.442695, %v748_v27 }
 0x3b0   :  { %839 = vrot.lane.b32.xlu2 %v828_v28, %s1474_s0  ;;  %1358 = vpow2.f32 %v1290_v30 }
 0x3b1   :  { %1360 = vpow2.f32 %v1288_v43 }
 0x3b2   :  { %1362 = vrcp.f32 %v761_v33 }
 0x3b6   :  { %v1359_v32 = vpop.eup %1358 }
 0x3b7   :  { %v764_v34 = vadd.f32 1.0, %v1359_v32  ;;  %v1361_v36 = vpop.eup %1360 }
 0x3b8   :  { %v762_v37 = vadd.f32 1.0, %v1361_v36  ;;  %v1363_v40 = vpop.eup %1362  ;;  %v880_v36 = vld [vmem:[#allocation5 + $0x138] sm:$0xff] }
 0x3b9   :  { %1364 = vrcp.f32 %v764_v34  ;;  %v766_v45 = vmul.f32 %v1363_v40, %v761_v33  ;;  %vm771_vm7 = vweird.f32 %v1363_v40  ;;  %v821_v62 = vand.u32 2147483648, %v764_v34  ;;  %932 = vmatpush.msra.mxu3 %v880_v36  ;;  %v873_v36 = vld [vmem:[#allocation5 + $0x1e0] sm:$0xff] }
 0x3ba   :  { %1366 = vpow2.f32 %v1289_v35  ;;  %vm772_vm10 = vmor %vm770_vm9, %vm771_vm7  ;;  %vm815_vm11 = vweird.f32 %v764_v34  ;;  %v819_v63 = vand.u32 2147483647, %v764_v34  ;;  %v791_v19 = vand.u32 2147483648, %v762_v37  ;;  %v953_v35 = vld [vmem:[#allocation5 + $0x140] sm:$0xff] }
 0x3bb   :  { %1368 = vrcp.f32 %v762_v37  ;;  %v767_v49 = vsub.f32 1.0, %v766_v45  ;;  %v822_v9 = vor.u32 1.1754944e-38, %v821_v62  ;;  %vm785_vm1 = vweird.f32 %v762_v37  ;;  %v877_v45 = vld [vmem:[#allocation5 + $0x120] sm:$0xff]  ;;  %v901_v62 = vld [vmem:[#allocation2 + $0xc8] sm:$0xff] }
 0x3bc   :  { %vm820_vm14 = vcmp.eq.f32.partialorder %v819_v63, 8.507059e+37  ;;  %v789_v20 = vand.u32 2147483647, %v762_v37  ;;  %v792_v23 = vor.u32 1.1754944e-38, %v791_v19 }
 0x3bd   :  { %v768_v53 = vmul.f32 %v1363_v40, %v767_v49  ;;  %v1000_v49 = vld [vmem:[#allocation5 + $0x170] sm:$0xff] }
 0x3be   :  { %vm790_vm3 = vcmp.eq.f32.partialorder %v789_v20, 8.507059e+37 }
 0x3bf   :  { %v1365_v42 = vpop.eup %1364  ;;  %v769_v56 = vadd.f32 %v1363_v40, %v768_v53 }
 0x3c0   :  { %v1367_v44 = vpop.eup %1366  ;;  %v811_v47 = vmul.f32 %v1365_v42, %v764_v34  ;;  %vm816_vm8 = vweird.f32 %v1365_v42  ;;  %v954_v34 = vld [vmem:[#allocation5 + $0x148] sm:$0xff] }
 0x3c1   :  { %v1650_v48 = vadd.f32 1.0, %v1367_v44  ;;  %v1369_v4 = vpop.eup %1368  ;;  %vm817_vm12 = vmor %vm815_vm11, %vm816_vm8  ;;  %v773_v0 = vsel %vm772_vm10, %v1363_v40, %v769_v56  ;;  %979 = vmatpush.msra.mxu0 %v954_v34  ;;  %v878_v40 = vld [vmem:[#allocation5 + $0x128] sm:$0xff]  ;;  %vm887_vm8 = vcmask 1043456   ;;  %v876_v34 = vld [vmem:[#allocation5 + $0x1f8] sm:$0xff] }
 0x3c2   :  { %v812_v50 = vsub.f32 1.0, %v811_v47  ;;  %v781_v55 = vmul.f32 %v1369_v4, %v762_v37  ;;  %v778_v12 = vsel %vm775_vm13, %v777_v8, %v773_v0  ;;  %vm786_vm15 = vweird.f32 %v1369_v4  ;;  %v879_v37 = vld [vmem:[#allocation5 + $0x130] sm:$0xff] }
 0x3c3   :  { %1370 = vrcp.f32 %v1650_v48  ;;  %vm787_vm2 = vmor %vm785_vm1, %vm786_vm15  ;;  %v806_v28 = vand.u32 2147483648, %v1650_v48  ;;  %vm800_vm5 = vweird.f32 %v1650_v48  ;;  %v804_v29 = vand.u32 2147483647, %v1650_v48  ;;  %980 = vmatpush.msra.mxu0 %v953_v35  ;;  %933 = vmatpush.msra.mxu3 %v879_v37 }
 0x3c4   :  { %v813_v54 = vmul.f32 %v1365_v42, %v812_v50  ;;  %v782_v59 = vsub.f32 1.0, %v781_v55  ;;  %v999_v50 = vld [vmem:[#allocation5 + $0x168] sm:$0xff] }
 0x3c5   :  { %v807_v43 = vor.u32 1.1754944e-38, %v806_v28  ;;  %vm805_vm7 = vcmp.eq.f32.partialorder %v804_v29, 8.507059e+37  ;;  %934 = vmatpush.msra.mxu3 %v878_v40 }
 0x3c6   :  { %v814_v58 = vadd.f32 %v1365_v42, %v813_v54  ;;  %v783_v2 = vmul.f32 %v1369_v4, %v782_v59  ;;  %v900_v54 = vld [vmem:[#allocation2 + $0xc0] sm:$0xff] }
 0x3c7   :  { %935 = vmatpush.msra.mxu3 %v877_v45 }
 0x3c8   :  { %v818_v1 = vsel %vm817_vm12, %v1365_v42, %v814_v58  ;;  %v784_v17 = vadd.f32 %v1369_v4, %v783_v2  ;;  %v902_v2 = vld [vmem:[#allocation2 + $0xd0] sm:$0xff] }
 0x3c9   :  { %v1371_v60 = vpop.eup %1370  ;;  %v823_v14 = vsel %vm820_vm14, %v822_v9, %v818_v1 }
 0x3ca   :  { %v796_v3 = vmul.f32 %v1371_v60, %v1650_v48  ;;  %v788_v21 = vsel %vm787_vm2, %v1369_v4, %v784_v17  ;;  %vm801_vm4 = vweird.f32 %v1371_v60  ;;  %v1001_v48 = vld [vmem:[#allocation5 + $0x178] sm:$0xff]  ;;  %v998_v4 = vld [vmem:[#allocation5 + $0x160] sm:$0xff] }
 0x3cb   :  { %v793_v7 = vsel %vm790_vm3, %v792_v23, %v788_v21  ;;  %vm802_vm6 = vmor %vm800_vm5, %vm801_vm4  ;;  %1035 = vmatpush.msra.mxu1 %v1001_v48  ;;  %v874_v21 = vld [vmem:[#allocation5 + $0x1e8] sm:$0xff] }
 0x3cc   :  { %v797_v18 = vsub.f32 1.0, %v796_v3  ;;  %v1004_v3 = vld [vmem:[#allocation2 + $0xe8] sm:$0xff] }
 0x3cd   :  { %1036 = vmatpush.msra.mxu1 %v1000_v49 }
 0x3ce   :  { %v798_v22 = vmul.f32 %v1371_v60, %v797_v18 }
 0x3cf   :  { %1037 = vmatpush.msra.mxu1 %v999_v50 }
 0x3d0   :  { %v799_v27 = vadd.f32 %v1371_v60, %v798_v22 }
 0x3d1   :  { %1038 = vmatpush.msra.mxu1 %v998_v4 }
 0x3d2   :  { %v803_v30 = vsel %vm802_vm6, %v1371_v60, %v799_v27  ;;  %v875_v27 = vld [vmem:[#allocation5 + $0x1f0] sm:$0xff] }
 0x3d3   :  { %v808_v32 = vsel %vm805_vm7, %v807_v43, %v803_v30 }
 0x40a   :  { %v834_v11 = vpop.permute.xlu1 %833  ;;  %v840_v13 = vpop.permute.xlu2 %839 }
 0x40b   :  { %v845_v15 = vmul.f32 %v834_v11, %v778_v12  ;;  %v848_v16 = vmul.f32 %v840_v13, %v823_v14  ;;  %v903_v11 = vld [vmem:[#allocation2 + $0xd8] sm:$0xff]  ;;  %v1005_v12 = vld [vmem:[#allocation2 + $0xf0] sm:$0xff] }
 0x40d   :  { %853 = vrot.lane.b32.xlu2 %v845_v15, %s1475_s1  ;;  %859 = vrot.lane.b32.xlu0 %v848_v16, %s1475_s1  ;;  %v1006_v15 = vld [vmem:[#allocation2 + $0xf8] sm:$0xff] }
 0x412   :  { %v836_v24 = vpop.permute.xlu0 %835 }
 0x413   :  { %v846_v26 = vmul.f32 %v836_v24, %v793_v7 }
 0x415   :  { %855 = vrot.lane.b32.xlu1 %v846_v26, %s1475_s1 }
 0x41a   :  { %v838_v31 = vpop.permute.xlu1 %837 }
 0x41b   :  { %v847_v33 = vmul.f32 %v838_v31, %v808_v32 }
 0x41d   :  { %857 = vrot.lane.b32.xlu2 %v847_v33, %s1475_s1 }
 0x467   :  { %v854_v42 = vpop.permute.xlu2 %853 }
 0x468   :  { %v865_v44 = vadd.f32 %v854_v42, %v1596_v10 }
 0x46a   :  { %v1663_v47 = vmul.f32 %v865_v44, %v1529_v39 }
 0x46c   :  { %1295 = vmatmul.msk.f32.vlgmr.msra.gmra.mxu0 %vm61_vm0, %v1663_v47  ;;  %v888_v39 = vrot.slane %v1663_v47, 4 }
 0x477   :  { %v858_v56 = vpop.permute.xlu2 %857 }
 0x47f   :  { %v860_v5 = vpop.permute.xlu0 %859 }
 0x480   :  { %v868_v51 = vadd.f32 %v860_v5, %v1602_v46  ;;  %v867_v46 = vadd.f32 %v858_v56, %v1619_v57 }
 0x482   :  { %v1669_v10 = vmul.f32 %v868_v51, %v1531_v41  ;;  %v1684_v63 = vmul.f32 %v867_v46, %v1527_v38 }
 0x484   :  { %v882_v53 = vrot.slane %v1669_v10, 4 }
 0x486   :  { %v898_v55 = vsel %vm887_vm8, %v882_v53, %v888_v39 }
 0x487   :  { %v856_v58 = vpop.permute.xlu1 %855  ;;  %v904_v59 = vmul.f32 %v900_v54, %v898_v55  ;;  %v1010_v16 = vmul.f32 %v1006_v15, %v898_v55 }
 0x488   :  { %v866_v60 = vadd.f32 %v856_v58, %v1611_v25 }
 0x489   :  { %1291 = vmatmul.msk.f32.vlgmr.msra.gmra.mxu3 %vm61_vm0, %v904_v59 }
 0x48a   :  { %v1678_v41 = vmul.f32 %v866_v60, %v1551_v52  ;;  %v891_v52 = vrot.slane %v1684_v63, 4 }
 0x48c   :  { %1296 = vmatmul.msk.f32.gmra.mxu0 %vm61_vm0, %v1678_v41  ;;  %v889_v61 = vrot.slane %v1678_v41, 4  ;;  %v893_v9 = vsel %vm887_vm8, %v891_v52, %v882_v53 }
 0x48d   :  { %v907_v13 = vmul.f32 %v903_v11, %v893_v9  ;;  %v1009_v14 = vmul.f32 %v1005_v12, %v893_v9 }
 0x48e   :  { %v890_v0 = vsel %vm887_vm8, %v888_v39, %v889_v61  ;;  %v892_v57 = vsel %vm887_vm8, %v889_v61, %v891_v52 }
 0x48f   :  { %v905_v25 = vmul.f32 %v901_v62, %v890_v0  ;;  %v1007_v1 = vmul.f32 %v1003_v6, %v890_v0  ;;  %v906_v8 = vmul.f32 %v902_v2, %v892_v57  ;;  %v1008_v38 = vmul.f32 %v1004_v3, %v892_v57 }
 0x491   :  { %1292 = vmatmul.msk.f32.gmra.mxu3 %vm61_vm0, %v905_v25  ;;  %1299 = vmatmul.msk.f32.vlgmr.msra.gmra.mxu1 %vm61_vm0, %v1007_v1 }
 0x494   :  { %1297 = vmatmul.msk.f32.gmra.mxu0 %vm61_vm0, %v1684_v63 }
 0x499   :  { %1293 = vmatmul.msk.f32.gmra.mxu3 %vm61_vm0, %v906_v8  ;;  %1300 = vmatmul.msk.f32.gmra.mxu1 %vm61_vm0, %v1008_v38 }
 0x49c   :  { %1298 = vmatmul.msk.f32.gmra.mxu0 %vm61_vm0, %v1669_v10 }
 0x4a1   :  { %1294 = vmatmul.msk.f32.gmra.mxu3 %vm61_vm0, %v907_v13  ;;  %1301 = vmatmul.msk.f32.gmra.mxu1 %vm61_vm0, %v1009_v14 }
 0x4a9   :  { %1302 = vmatmul.msk.f32.gmra.mxu1 %vm61_vm0, %v1010_v16 }
 0x4e9   :  { %v982_v17 = vpop.f32.mrf.mxu0 }
 0x509   :  { %v985_v20 = vpop.f32.mrf.mxu0 }
 0x50c   :  { %v937_v18 = vpop.f32.mrf.mxu3 }
 0x50d   :  { %v949_v44 = vadd.f32 %v937_v18, %v873_v36 }
 0x50e   :  { %v1040_v19 = vpop.f32.mrf.mxu1 }
 0x50f   :  { %v994_v50 = vadd.f32 %v982_v17, %v949_v44 }
 0x511   :  { %v988_v29 = vpop.f32.mrf.mxu0  ;;  %v1052_v5 = vadd.f32 %v1040_v19, %v994_v50 }
 0x513   :  { %v1132_v51 = vsub.f32 %v1052_v5, %v1663_v47  ;;  %v1303_v8 = vmul.f32 -1.442695, %v1052_v5 }
 0x514   :  { %v940_v22 = vpop.f32.mrf.mxu3 }
 0x515   :  { %v950_v23 = vadd.f32 %v940_v22, %v874_v21 }
 0x516   :  { %v1043_v24 = vpop.f32.mrf.mxu1 }
 0x517   :  { %v995_v7 = vadd.f32 %v985_v20, %v950_v23 }
 0x519   :  { %v1053_v26 = vadd.f32 %v1043_v24, %v995_v7  ;;  %v991_v42 = vpop.f32.mrf.mxu0 }
 0x51b   :  { %v1133_v28 = vsub.f32 %v1053_v26, %v1678_v41  ;;  %v1304_v39 = vmul.f32 -1.442695, %v1053_v26 }
 0x51c   :  { %v943_v30 = vpop.f32.mrf.mxu3 }
 0x51d   :  { %v951_v43 = vadd.f32 %v943_v30, %v875_v27  ;;  %1142 = vrot.lane.b32.xlu2 %v1133_v28, %s1474_s0  ;;  %1372 = vpow2.f32 %v1304_v39  ;;  %v1207_v39 = vld [vmem:[#allocation5 + $0x220] sm:$0xff] }
 0x51e   :  { %v1046_v31 = vpop.f32.mrf.mxu1  ;;  %1224 = vmatpush.msrb.mxu3 %v1207_v39 }
 0x51f   :  { %v996_v32 = vadd.f32 %v988_v29, %v951_v43 }
 0x521   :  { %v1054_v33 = vadd.f32 %v1046_v31, %v996_v32 }
 0x523   :  { %v1134_v35 = vsub.f32 %v1054_v33, %v1684_v63  ;;  %v1373_v53 = vpop.eup %1372  ;;  %v1305_v59 = vmul.f32 -1.442695, %v1054_v33 }
 0x524   :  { %v946_v37 = vpop.f32.mrf.mxu3  ;;  %v1069_v54 = vadd.f32 1.0, %v1373_v53  ;;  %v1206_v53 = vld [vmem:[#allocation5 + $0x218] sm:$0xff] }
 0x525   :  { %v952_v40 = vadd.f32 %v946_v37, %v876_v34  ;;  %1144 = vrot.lane.b32.xlu1 %v1134_v35, %s1474_s0  ;;  %1225 = vmatpush.msrb.mxu3 %v1206_v53 }
 0x526   :  { %v1049_v48 = vpop.f32.mrf.mxu1  ;;  %1374 = vrcp.f32 %v1069_v54  ;;  %v1098_v61 = vand.u32 2147483648, %v1069_v54  ;;  %vm1092_vm10 = vweird.f32 %v1069_v54  ;;  %v1096_v6 = vand.u32 2147483647, %v1069_v54 }
 0x527   :  { %v997_v45 = vadd.f32 %v991_v42, %v952_v40  ;;  %1376 = vpow2.f32 %v1305_v59 }
 0x528   :  { %v1099_v1 = vor.u32 1.1754944e-38, %v1098_v61  ;;  %vm1097_vm12 = vcmp.eq.f32.partialorder %v1096_v6, 8.507059e+37 }
 0x529   :  { %v1055_v49 = vadd.f32 %v1049_v48, %v997_v45 }
 0x52b   :  { %v1135_v4 = vsub.f32 %v1055_v49, %v1669_v10  ;;  %v1306_v62 = vmul.f32 -1.442695, %v1055_v49 }
 0x52c   :  { %v1375_v55 = vpop.eup %1374 }
 0x52d   :  { %1146 = vrot.lane.b32.xlu0 %v1135_v4, %s1474_s0  ;;  %v1088_v56 = vmul.f32 %v1375_v55, %v1069_v54  ;;  %vm1093_vm9 = vweird.f32 %v1375_v55  ;;  %v1377_v0 = vpop.eup %1376  ;;  %1378 = vpow2.f32 %v1306_v62  ;;  %v1205_v54 = vld [vmem:[#allocation5 + $0x210] sm:$0xff]  ;;  %v1388_v62 = vld [vmem:[#allocation2 + $0x38] sm:$0xff] }
 0x52e   :  { %vm1094_vm11 = vmor %vm1092_vm10, %vm1093_vm9  ;;  %v1070_v52 = vadd.f32 1.0, %v1377_v0  ;;  %1226 = vmatpush.msrb.mxu3 %v1205_v54  ;;  %v1389_v0 = vld [vmem:[#allocation2 + $0x30] sm:$0xff] }
 0x52f   :  { %v1089_v58 = vsub.f32 1.0, %v1088_v56 }
 0x530   :  { %1380 = vrcp.f32 %v1070_v52  ;;  %v1113_v22 = vand.u32 2147483648, %v1070_v52  ;;  %vm1107_vm14 = vweird.f32 %v1070_v52  ;;  %v1111_v23 = vand.u32 2147483647, %v1070_v52 }
 0x531   :  { %v1090_v60 = vmul.f32 %v1375_v55, %v1089_v58  ;;  %1382 = vpow2.f32 %v1303_v8 }
 0x532   :  { %v1114_v27 = vor.u32 1.1754944e-38, %v1113_v22  ;;  %vm1112_vm1 = vcmp.eq.f32.partialorder %v1111_v23, 8.507059e+37 }
 0x533   :  { %v1091_v46 = vadd.f32 %v1375_v55, %v1090_v60  ;;  %v1379_v38 = vpop.eup %1378 }
 0x534   :  { %v1071_v9 = vadd.f32 1.0, %v1379_v38  ;;  %v1180_v38 = vld [vmem:[#allocation5 + $0x200] sm:$0xff] }
 0x535   :  { %1140 = vrot.lane.b32.xlu0 %v1132_v51, %s1474_s0  ;;  %v1095_v25 = vsel %vm1094_vm11, %v1375_v55, %v1091_v46  ;;  %v1204_v55 = vld [vmem:[#allocation5 + $0x208] sm:$0xff] }
 0x536   :  { %v1100_v2 = vsel %vm1097_vm12, %v1099_v1, %v1095_v25  ;;  %v1381_v11 = vpop.eup %1380  ;;  %1384 = vrcp.f32 %v1071_v9  ;;  %v1128_v32 = vand.u32 2147483648, %v1071_v9  ;;  %vm1122_vm3 = vweird.f32 %v1071_v9  ;;  %1227 = vmatpush.msrb.mxu3 %v1204_v55  ;;  %v1390_v1 = vld [vmem:[#allocation2 + $0x28] sm:$0xff] }
 0x537   :  { %v1383_v12 = vpop.eup %1382  ;;  %v1103_v13 = vmul.f32 %v1381_v11, %v1070_v52  ;;  %vm1108_vm13 = vweird.f32 %v1381_v11  ;;  %v1126_v33 = vand.u32 2147483647, %v1071_v9 }
 0x538   :  { %v1068_v14 = vadd.f32 1.0, %v1383_v12  ;;  %vm1109_vm15 = vmor %vm1107_vm14, %vm1108_vm13  ;;  %v1129_v36 = vor.u32 1.1754944e-38, %v1128_v32 }
 0x539   :  { %v1104_v15 = vsub.f32 1.0, %v1103_v13  ;;  %vm1127_vm5 = vcmp.eq.f32.partialorder %v1126_v33, 8.507059e+37 }
 0x53a   :  { %1386 = vrcp.f32 %v1068_v14  ;;  %v1083_v45 = vand.u32 2147483648, %v1068_v14  ;;  %vm1077_vm7 = vweird.f32 %v1068_v14  ;;  %v1081_v48 = vand.u32 2147483647, %v1068_v14 }
 0x53b   :  { %v1105_v17 = vmul.f32 %v1381_v11, %v1104_v15 }
 0x53c   :  { %v1385_v16 = vpop.eup %1384  ;;  %v1084_v50 = vor.u32 1.1754944e-38, %v1083_v45  ;;  %vm1082_vm9 = vcmp.eq.f32.partialorder %v1081_v48, 8.507059e+37 }
 0x53d   :  { %v1118_v18 = vmul.f32 %v1385_v16, %v1071_v9  ;;  %v1106_v19 = vadd.f32 %v1381_v11, %v1105_v17  ;;  %vm1123_vm2 = vweird.f32 %v1385_v16 }
 0x53e   :  { %vm1124_vm4 = vmor %vm1122_vm3, %vm1123_vm2 }
 0x53f   :  { %v1119_v20 = vsub.f32 1.0, %v1118_v18  ;;  %v1110_v24 = vsel %vm1109_vm15, %v1381_v11, %v1106_v19 }
 0x540   :  { %v1387_v21 = vpop.eup %1386  ;;  %v1115_v29 = vsel %vm1112_vm1, %v1114_v27, %v1110_v24 }
 0x541   :  { %v1120_v7 = vmul.f32 %v1385_v16, %v1119_v20  ;;  %v1073_v26 = vmul.f32 %v1387_v21, %v1068_v14  ;;  %vm1078_vm6 = vweird.f32 %v1387_v21 }
 0x542   :  { %vm1079_vm8 = vmor %vm1077_vm7, %vm1078_vm6 }
 0x543   :  { %v1121_v43 = vadd.f32 %v1385_v16, %v1120_v7  ;;  %v1074_v31 = vsub.f32 1.0, %v1073_v26 }
 0x545   :  { %v1125_v34 = vsel %vm1124_vm4, %v1385_v16, %v1121_v43  ;;  %v1075_v35 = vmul.f32 %v1387_v21, %v1074_v31 }
 0x546   :  { %v1130_v40 = vsel %vm1127_vm5, %v1129_v36, %v1125_v34 }
 0x547   :  { %v1076_v44 = vadd.f32 %v1387_v21, %v1075_v35 }
 0x549   :  { %v1080_v49 = vsel %vm1079_vm8, %v1387_v21, %v1076_v44 }
 0x54a   :  { %v1085_v4 = vsel %vm1082_vm9, %v1084_v50, %v1080_v49 }
 0x577   :  { %v1143_v57 = vpop.permute.xlu2 %1142 }
 0x578   :  { %v1153_v3 = vmul.f32 %v1143_v57, %v1100_v2 }
 0x57a   :  { %1162 = vrot.lane.b32.xlu0 %v1153_v3, %s1475_s1  ;;  %v1391_v3 = vld [vmem:[#allocation2 + $0x20] sm:$0xff] }
 0x597   :  { %v1145_v28 = vpop.permute.xlu1 %1144 }
 0x598   :  { %v1154_v30 = vmul.f32 %v1145_v28, %v1115_v29 }
 0x59a   :  { %1164 = vrot.lane.b32.xlu2 %v1154_v30, %s1475_s1 }
 0x59f   :  { %v1147_v37 = vpop.permute.xlu0 %1146 }
 0x5a0   :  { %v1155_v42 = vmul.f32 %v1147_v37, %v1130_v40 }
 0x5a2   :  { %1166 = vrot.lane.b32.xlu1 %v1155_v42, %s1475_s1 }
 0x5a7   :  { %v1141_v5 = vpop.permute.xlu0 %1140 }
 0x5a8   :  { %v1152_v51 = vmul.f32 %v1141_v5, %v1085_v4 }
 0x5aa   :  { %1160 = vrot.lane.b32.xlu1 %v1152_v51, %s1475_s1 }
 0x5ec   :  { %v1163_v58 = vpop.permute.xlu0 %1162 }
 0x5ed   :  { %v1173_v61 = vadd.f32 %v1163_v58, %v1678_v41  ;;  %v1208_v41 = vld [vmem:[#allocation5 + $0x228] sm:$0xff] }
 0x5ef   :  { %v1177_v52 = vmul.f32 %v1390_v1, %v1173_v61 }
 0x5f4   :  { %v1165_v56 = vpop.permute.xlu2 %1164 }
 0x5f5   :  { %v1174_v60 = vadd.f32 %v1165_v56, %v1684_v63 }
 0x5f7   :  { %v1178_v25 = vmul.f32 %v1389_v0, %v1174_v60 }
 0x614   :  { %v1167_v59 = vpop.permute.xlu1 %1166 }
 0x615   :  { %v1175_v46 = vadd.f32 %v1167_v59, %v1669_v10 }
 0x617   :  { %v1179_v6 = vmul.f32 %v1388_v62, %v1175_v46 }
 0x619   :  { %1196 = vmatpush.msrb.mxu2 %v1179_v6 }
 0x61b   :  { %1197 = vmatpush.msrb.mxu2 %v1178_v25 }
 0x61c   :  { %v1161_v57 = vpop.permute.xlu1 %1160 }
 0x61d   :  { %v1172_v2 = vadd.f32 %v1161_v57, %v1663_v47  ;;  %1198 = vmatpush.msrb.mxu2 %v1177_v52 }
 0x61f   :  { %v1176_v8 = vmul.f32 %v1391_v3, %v1172_v2 }
 0x621   :  { %1199 = vmatpush.msrb.mxu2 %v1176_v8 }
 0x622   :  { %1307 = vmatmul.msk.f32.vlgmr.msrb.gmra.mxu2 %vm61_vm0, %v1180_v38 }
 0x6a5   :  { %v1201_v10 = vpop.f32.mrf.mxu2 }
 0x6a6   :  { %1308 = vmatmul.msk.f32.vlgmr.msrb.gmra.mxu3 %vm61_vm0, %v1201_v10 }
 0x729   :  { %v1229_v63 = vpop.f32.mrf.mxu3 }
 0x72a   :  { %v1230_v9 = vadd.f32 %v1229_v63, %v1208_v41 }
 0x72c   :  { %1232 = vst [vmem:[#allocation7] sm:$0xff] %v1230_v9 }
 0x72d   :  { %1243 = dma.vmem_to_hbm [thread:$0]  %s1239_s22, 128, %s1241_s25, [#allocation4]  }
 0x72e   :  { %1468 = dma.done.wait [#allocation4], 128  }
 0x72f   :  { %1469 = vsyncadd [#allocation4], 4294967168 }
 0x730   :  { %1248 = vsyncpa [#allocation3], 1 }
 0x731   :  { %1249 = vsyncpa [#allocation6], 1 }
 0x732   :  { %1250 = vsyncpa [#allocation4], 1 }

</bundles_post_ra>
